<compile_context>
chip_gen: v7x
topology: tpu7x:2x2x1
jax: 0.10.0
libtpu: 0.0.40
codegen_flags: <defaults>
</compile_context>

<pallas_src>
import math
import functools

import jax
import jax.numpy as jnp
from jax.experimental import pallas as pl
from jax.experimental.pallas import tpu as pltpu


_VMEM_LIMIT = 48 * 1024 * 1024  # headroom on v5e/v6e (128 MiB) and v7x (64 MiB)


def _pick_tile(dim, pref, align):
    """Block size: full dim if small, else the largest power-of-two divisor of
    `dim` that is <= pref and >= align; falls back to the full dim (always legal)."""
    if dim <= pref:
        return dim
    t = pref
    while t >= align:
        if dim % t == 0:
            return t
        t //= 2
    return dim


def _approx_recip(x):
    # EUP approx reciprocal frees VALU slots; fall back to divide if unavailable.
    if hasattr(pl, "reciprocal"):
        return pl.reciprocal(x, approx=True)
    return 1.0 / x


# ----------------------------------------------------------------------------
# Tiled matmul + bias (+ optional ReLU)
# ----------------------------------------------------------------------------
def _matmul_bias_kernel(x_ref, w_ref, b_ref, o_ref, acc_ref, *, activation):
    @pl.when(pl.program_id(2) == 0)
    def _():
        acc_ref[...] = jnp.zeros_like(acc_ref)

    acc_ref[...] += jnp.dot(
        x_ref[...].astype(jnp.bfloat16),
        w_ref[...].astype(jnp.bfloat16),
        preferred_element_type=jnp.float32,
    )

    @pl.when(pl.program_id(2) == pl.num_programs(2) - 1)
    def _():
        y = acc_ref[...] + b_ref[...]
        if activation == "relu":
            y = jnp.maximum(y, 0.0)
        o_ref[...] = y


def pallas_matmul_bias(x, w, b, activation=None, tm=256, tn=256, tk=512):
    """y = act(x @ w + b).  x:(M,K)  w:(K,N)  b:(N,).  bf16 MXU, f32 accumulate."""
    M, K = x.shape
    N = w.shape[1]
    tm = _pick_tile(M, tm, 8)
    tn = _pick_tile(N, tn, 128)
    tk = _pick_tile(K, tk, 128)
    grid = (M // tm, N // tn, K // tk)
    kernel = functools.partial(_matmul_bias_kernel, activation=activation)
    return pl.pallas_call(
        kernel,
        out_shape=jax.ShapeDtypeStruct((M, N), jnp.float32),
        grid=grid,
        in_specs=[
            pl.BlockSpec((tm, tk), lambda i, j, k: (i, k)),
            pl.BlockSpec((tk, tn), lambda i, j, k: (k, j)),
            pl.BlockSpec((1, tn), lambda i, j, k: (0, j)),
        ],
        out_specs=pl.BlockSpec((tm, tn), lambda i, j, k: (i, j)),
        scratch_shapes=[pltpu.VMEM((tm, tn), jnp.float32)],
        compiler_params=pltpu.CompilerParams(
            dimension_semantics=("parallel", "parallel", "arbitrary"),
            vmem_limit_bytes=_VMEM_LIMIT,
        ),
    )(x, w, b.reshape(1, N))


# ----------------------------------------------------------------------------
# Multi-head attention: all heads handled inside the kernel, lane-dense output
# ----------------------------------------------------------------------------
def _mha_kernel(q_ref, k_ref, v_ref, o_ref, *, num_heads, scale):
    q = q_ref[0] * scale  # (sq, H) f32 -- scale once instead of per (sq,Sk) tile
    k = k_ref[0]          # (Sk, H)
    v = v_ref[0]          # (Sk, H)
    H = q.shape[-1]
    dh = H // num_heads
    outs = []
    for h in range(num_heads):        # static unrolled loop over heads
        lo, hi = h * dh, (h + 1) * dh
        qh = q[:, lo:hi].astype(jnp.bfloat16)
        kh = k[:, lo:hi].astype(jnp.bfloat16)
        vh = v[:, lo:hi].astype(jnp.bfloat16)
        s = jax.lax.dot_general(
            qh, kh, (((1,), (1,)), ((), ())),
            preferred_element_type=jnp.float32)
        s = s - jnp.max(s, axis=-1, keepdims=True)
        p = jnp.exp(s)
        p = p * _approx_recip(jnp.sum(p, axis=-1, keepdims=True))
        outs.append(jnp.dot(p.astype(jnp.bfloat16), vh,
                            preferred_element_type=jnp.float32))
    # single lane-dense store of the full (sq, H) slab
    o_ref[0] = jnp.concatenate(outs, axis=-1)


def pallas_mha(q_src, k_src, v_src, *, H, num_heads,
               q_block, k_block, v_block, sq_block=256):
    """softmax(Q K^T / sqrt(dh)) V for all heads.

    q_src:(B,Sq,*) / k_src,v_src:(B,Sk,*); the `*_block` indices select the
    H-wide lane group inside each source tensor (fused QKV/KV projections)."""
    B, Sq = q_src.shape[0], q_src.shape[1]
    Sk = k_src.shape[1]
    dh = H // num_heads
    scale = 1.0 / math.sqrt(dh)
    sq_blk = _pick_tile(Sq, sq_block, 8)
    grid = (B, Sq // sq_blk)
    kernel = functools.partial(_mha_kernel, num_heads=num_heads, scale=scale)
    # TODO(synk): for long sequences, tile the Sk axis with a flash-style
    # online-softmax (m/l/acc scratch) instead of the full (Sq,Sk) score block.
    return pl.pallas_call(
        kernel,
        out_shape=jax.ShapeDtypeStruct((B, Sq, H), jnp.float32),
        grid=grid,
        in_specs=[
            pl.BlockSpec((1, sq_blk, H), lambda b, i: (b, i, q_block)),
            pl.BlockSpec((1, Sk, H), lambda b, i: (b, 0, k_block)),
            pl.BlockSpec((1, Sk, H), lambda b, i: (b, 0, v_block)),
        ],
        out_specs=pl.BlockSpec((1, sq_blk, H), lambda b, i: (b, i, 0)),
        compiler_params=pltpu.CompilerParams(
            dimension_semantics=("parallel", "parallel"),
            vmem_limit_bytes=_VMEM_LIMIT,
        ),
    )(q_src, k_src, v_src)


def _column_views(fused, width, n):
    """n adjacent column groups of `width` lanes inside `fused`.

    Returns [(array, lane_block_index), ...].  When `width` is 128-aligned the
    fused tensor itself is handed to the attention kernel and the BlockSpec
    DMAs just that column group (zero extra HBM passes).  Otherwise (unaligned
    toy shapes) the groups are materialized with plain-JAX slices so every
    Pallas block keeps a legal (8,128)-or-full shape."""
    if width % 128 == 0:
        return [(fused, i) for i in range(n)]
    return [(fused[..., i * width:(i + 1) * width], 0) for i in range(n)]


# ----------------------------------------------------------------------------
# Fused: linear (attention output projection) + residual add + LayerNorm
# ----------------------------------------------------------------------------
def _linear_res_ln_kernel(x_ref, w_ref, b_ref, r_ref, g_ref, bb_ref, o_ref, *, eps):
    y = jnp.dot(x_ref[...].astype(jnp.bfloat16), w_ref[...].astype(jnp.bfloat16),
                preferred_element_type=jnp.float32) + b_ref[...]
    z = y + r_ref[...]
    mean = jnp.mean(z, axis=-1, keepdims=True)
    c = z - mean
    var = jnp.mean(c * c, axis=-1, keepdims=True)
    o_ref[...] = c * jax.lax.rsqrt(var + eps) * g_ref[...] + bb_ref[...]


def pallas_linear_res_ln(x, w, b, res, gamma, beta, eps=1e-5, tm=256):
    """LayerNorm(res + (x @ w + b)).  x,res:(M,H)  w:(H,H)."""
    M, K = x.shape
    N = w.shape[1]
    tm = _pick_tile(M, tm, 8)
    kernel = functools.partial(_linear_res_ln_kernel, eps=eps)
    return pl.pallas_call(
        kernel,
        out_shape=jax.ShapeDtypeStruct((M, N), jnp.float32),
        grid=(M // tm,),
        in_specs=[
            pl.BlockSpec((tm, K), lambda i: (i, 0)),
            pl.BlockSpec((K, N), lambda i: (0, 0)),
            pl.BlockSpec((1, N), lambda i: (0, 0)),
            pl.BlockSpec((tm, N), lambda i: (i, 0)),
            pl.BlockSpec((1, N), lambda i: (0, 0)),
            pl.BlockSpec((1, N), lambda i: (0, 0)),
        ],
        out_specs=pl.BlockSpec((tm, N), lambda i: (i, 0)),
        compiler_params=pltpu.CompilerParams(
            dimension_semantics=("parallel",),
            vmem_limit_bytes=_VMEM_LIMIT,
        ),
    )(x, w, b.reshape(1, N), res, gamma.reshape(1, N), beta.reshape(1, N))


# ----------------------------------------------------------------------------
# Fused: FFN (Linear -> ReLU -> Linear) + residual add + LayerNorm
# ----------------------------------------------------------------------------
def _ffn_res_ln_kernel(x_ref, w1_ref, b1_ref, w2_ref, b2_ref, g_ref, bb_ref,
                       o_ref, *, eps):
    x = x_ref[...]
    h = jnp.dot(x.astype(jnp.bfloat16), w1_ref[...].astype(jnp.bfloat16),
                preferred_element_type=jnp.float32) + b1_ref[...]
    h = jnp.maximum(h, 0.0)                          # (tm, ff) stays in VMEM
    y = jnp.dot(h.astype(jnp.bfloat16), w2_ref[...].astype(jnp.bfloat16),
                preferred_element_type=jnp.float32) + b2_ref[...]
    z = x + y
    mean = jnp.mean(z, axis=-1, keepdims=True)
    c = z - mean
    var = jnp.mean(c * c, axis=-1, keepdims=True)
    o_ref[...] = c * jax.lax.rsqrt(var + eps) * g_ref[...] + bb_ref[...]


def pallas_ffn_res_ln(x, w1, b1, w2, b2, gamma, beta, eps=1e-5, tm=256):
    """LayerNorm(x + W2 relu(W1 x + b1) + b2) with the ff intermediate in VMEM."""
    M, H = x.shape
    F = w1.shape[1]
    tm = _pick_tile(M, tm, 8)
    kernel = functools.partial(_ffn_res_ln_kernel, eps=eps)
    # TODO(synk): for very large ff_dim, tile the F axis inside the kernel
    # (loop with a VMEM accumulator) instead of one full (H,F)/(F,H) block.
    return pl.pallas_call(
        kernel,
        out_shape=jax.ShapeDtypeStruct((M, H), jnp.float32),
        grid=(M // tm,),
        in_specs=[
            pl.BlockSpec((tm, H), lambda i: (i, 0)),
            pl.BlockSpec((H, F), lambda i: (0, 0)),
            pl.BlockSpec((1, F), lambda i: (0, 0)),
            pl.BlockSpec((F, H), lambda i: (0, 0)),
            pl.BlockSpec((1, H), lambda i: (0, 0)),
            pl.BlockSpec((1, H), lambda i: (0, 0)),
            pl.BlockSpec((1, H), lambda i: (0, 0)),
        ],
        out_specs=pl.BlockSpec((tm, H), lambda i: (i, 0)),
        compiler_params=pltpu.CompilerParams(
            dimension_semantics=("parallel",),
            vmem_limit_bytes=_VMEM_LIMIT,
        ),
    )(x, w1, b1.reshape(1, F), w2, b2.reshape(1, H),
      gamma.reshape(1, H), beta.reshape(1, H))


# ----------------------------------------------------------------------------
# Model pieces built from the kernels
# ----------------------------------------------------------------------------
def decoder_layer(x_flat, enc_flat, B, S, S_enc, H, p, num_heads):
    # --- self attention (fused QKV projection, no mask: tgt_mask=None) ---
    qkv = pallas_matmul_bias(x_flat, p["sa_w_qkv"], p["sa_b_qkv"])       # (M, 3H)
    qkv3 = qkv.reshape(B, S, 3 * H)
    (qa, qi), (ka, ki), (va, vi) = _column_views(qkv3, H, 3)
    sa = pallas_mha(qa, ka, va, H=H, num_heads=num_heads,
                    q_block=qi, k_block=ki, v_block=vi)                  # (B, S, H)
    x_flat = pallas_linear_res_ln(sa.reshape(B * S, H), p["sa_wo"], p["sa_bo"],
                                  x_flat, p["ln1_g"], p["ln1_b"])

    # --- encoder-decoder attention (fused KV projection of encoder output) ---
    q = pallas_matmul_bias(x_flat, p["ca_wq"], p["ca_bq"])               # (M, H)
    kv = pallas_matmul_bias(enc_flat, p["ca_w_kv"], p["ca_b_kv"])        # (Menc, 2H)
    kv3 = kv.reshape(B, S_enc, 2 * H)
    (ka, ki), (va, vi) = _column_views(kv3, H, 2)
    ca = pallas_mha(q.reshape(B, S, H), ka, va, H=H, num_heads=num_heads,
                    q_block=0, k_block=ki, v_block=vi)
    x_flat = pallas_linear_res_ln(ca.reshape(B * S, H), p["ca_wo"], p["ca_bo"],
                                  x_flat, p["ln2_g"], p["ln2_b"])

    # --- feed-forward + residual + LayerNorm (fully fused) ---
    x_flat = pallas_ffn_res_ln(x_flat, p["ff_w1"], p["ff_b1"],
                               p["ff_w2"], p["ff_b2"], p["ln3_g"], p["ln3_b"])
    return x_flat


def sinusoidal_pos_encoding(seq_len, d_model):
    pos = jnp.arange(seq_len, dtype=jnp.float32)[:, None]
    i = jnp.arange(0, d_model, 2, dtype=jnp.float32)
    angle = pos / jnp.power(10000.0, i / d_model)
    pe = jnp.zeros((seq_len, d_model), jnp.float32)
    pe = pe.at[:, 0::2].set(jnp.sin(angle))
    pe = pe.at[:, 1::2].set(jnp.cos(angle))
    return pe


def decoder_forward(tokens, encoder_output, params, num_heads):
    """tokens:(B,1,S) int32 ids, encoder_output:(B,S_enc,H) -> (B,S,output_dim)."""
    # TODO(synk): embedding gather + PE add kept in plain JAX (a scalar-prefetch
    # gather kernel is possible); fused here so no standalone add kernel is needed.
    x = params["embedding"][tokens]          # (B,1,S,H)
    x = jnp.squeeze(x, axis=1)               # (B,S,H)   -- matches x.squeeze(1)
    B, S, H = x.shape
    x = x + sinusoidal_pos_encoding(S, H)[None, :, :]

    S_enc = encoder_output.shape[1]
    x_flat = x.reshape(B * S, H)
    enc_flat = encoder_output.reshape(B * S_enc, H)
    for lp in params["layers"]:
        x_flat = decoder_layer(x_flat, enc_flat, B, S, S_enc, H, lp, num_heads)

    out = pallas_matmul_bias(x_flat, params["out_w"], params["out_b"])
    return out.reshape(B, S, params["out_w"].shape[1])


# ----------------------------------------------------------------------------
# Deterministic parameter init (weights stored in fused QKV / KV layout)
# ----------------------------------------------------------------------------
def init_params(key, input_dim, hidden_dim, num_heads, num_layers, ff_dim, output_dim):
    keys = iter(jax.random.split(key, 4 + num_layers * 7))

    def nrm(shape, scale=0.02):
        return scale * jax.random.normal(next(keys), shape, dtype=jnp.float32)

    def zeros(n):
        return jnp.zeros((n,), jnp.float32)

    def ones(n):
        return jnp.ones((n,), jnp.float32)

    H, F = hidden_dim, ff_dim
    layers = []
    for _ in range(num_layers):
        layers.append({
            "sa_w_qkv": nrm((H, 3 * H)), "sa_b_qkv": zeros(3 * H),
            "sa_wo": nrm((H, H)), "sa_bo": zeros(H),
            "ca_wq": nrm((H, H)), "ca_bq": zeros(H),
            "ca_w_kv": nrm((H, 2 * H)), "ca_b_kv": zeros(2 * H),
            "ca_wo": nrm((H, H)), "ca_bo": zeros(H),
            "ln1_g": ones(H), "ln1_b": zeros(H),
            "ln2_g": ones(H), "ln2_b": zeros(H),
            "ln3_g": ones(H), "ln3_b": zeros(H),
            "ff_w1": nrm((H, F)), "ff_b1": zeros(F),
            "ff_w2": nrm((F, H)), "ff_b2": zeros(H),
        })

    return {
        "embedding": nrm((input_dim, H), scale=1.0),
        "layers": layers,
        "out_w": nrm((H, output_dim)),
        "out_b": zeros(output_dim),
    }


# ----------------------------------------------------------------------------
# main
# ----------------------------------------------------------------------------
if __name__ == "__main__":
    # small shapes
    B, S, S_ENC = 2, 8, 8
    INPUT_DIM, HIDDEN, HEADS, LAYERS, FF, OUT_DIM = 16, 32, 4, 2, 64, 16

    key = jax.random.PRNGKey(0)
    k_tok, k_enc, k_par = jax.random.split(key, 3)

    tokens = jax.random.randint(k_tok, (B, 1, S), 0, INPUT_DIM, dtype=jnp.int32)
    encoder_output = jax.random.normal(k_enc, (B, S_ENC, HIDDEN), dtype=jnp.float32)
    params = init_params(k_par, INPUT_DIM, HIDDEN, HEADS, LAYERS, FF, OUT_DIM)

    fwd = jax.jit(functools.partial(decoder_forward, num_heads=HEADS))
    out = jax.block_until_ready(fwd(tokens, encoder_output, params))

    assert out.shape == (B, S, OUT_DIM), out.shape
    assert bool(jnp.all(jnp.isfinite(out)))
    print("KERNEL_OK")
</pallas_src>

<mosaic_0001>
module attributes {stable_mosaic.version = 11 : i64} {
  func.func @_matmul_bias_kernel(%arg0: i32, %arg1: i32, %arg2: i32, %arg3: memref<16x32xf32, #tpu.memory_space<vmem>>, %arg4: memref<32x96xf32, #tpu.memory_space<vmem>>, %arg5: memref<1x96xf32, #tpu.memory_space<vmem>>, %arg6: memref<16x96xf32, #tpu.memory_space<vmem>>, %arg7: memref<16x96xf32, #tpu.memory_space<vmem>>) attributes {dimension_semantics = [#tpu.dimension_semantics<parallel>, #tpu.dimension_semantics<parallel>, #tpu.dimension_semantics<arbitrary>], iteration_bounds = array<i64: 1, 1, 1>, scalar_prefetch = 0 : i64, scratch_operands = 1 : i64, tpu.core_type = #tpu.core_type<tc>, window_params = [{transform_indices = @transform_0, window_bounds = array<i64: 16, 32>}, {transform_indices = @transform_1, window_bounds = array<i64: 32, 96>}, {transform_indices = @transform_2, window_bounds = array<i64: 1, 96>}, {transform_indices = @transform_3, window_bounds = array<i64: 16, 96>}]} {
    %c0_i32 = arith.constant 0 : i32
    %0 = arith.cmpi eq, %arg2, %c0_i32 : i32
    %1 = arith.extui %0 : i1 to i32
    %c0_i32_0 = arith.constant 0 : i32
    %2 = arith.cmpi ne, %1, %c0_i32_0 : i32
    scf.if %2 {
      %cst_10 = arith.constant 0.000000e+00 : f32
      %14 = vector.broadcast %cst_10 : f32 to vector<16x96xf32>
      %c0_11 = arith.constant 0 : index
      %c0_12 = arith.constant 0 : index
      %15 = vector.load %arg7[%c0_11, %c0_12] : memref<16x96xf32, #tpu.memory_space<vmem>>, vector<16x96xf32>
      tpu.vector_store %arg7[%c0_11, %c0_12], %14 {strides = array<i32>} : memref<16x96xf32, #tpu.memory_space<vmem>>, vector<16x96xf32>,
    } else {
    }
    %c0 = arith.constant 0 : index
    %c0_1 = arith.constant 0 : index
    %3 = vector.load %arg7[%c0, %c0_1] : memref<16x96xf32, #tpu.memory_space<vmem>>, vector<16x96xf32>
    %c0_2 = arith.constant 0 : index
    %c0_3 = arith.constant 0 : index
    %4 = vector.load %arg3[%c0_2, %c0_3] : memref<16x32xf32, #tpu.memory_space<vmem>>, vector<16x32xf32>
    %5 = arith.truncf %4 : vector<16x32xf32> to vector<16x32xbf16>
    %c0_4 = arith.constant 0 : index
    %c0_5 = arith.constant 0 : index
    %6 = vector.load %arg4[%c0_4, %c0_5] : memref<32x96xf32, #tpu.memory_space<vmem>>, vector<32x96xf32>
    %7 = arith.truncf %6 : vector<32x96xf32> to vector<32x96xbf16>
    %cst = arith.constant dense<0.000000e+00> : vector<16x96xf32>
    %8 = tpu.matmul %5, %7, %cst {dimension_numbers = #tpu.dot_dimension_numbers<[1], [0], [0], [1], [0, 0, 1, 1], [], []>} : vector<16x32xbf16>, vector<32x96xbf16>, vector<16x96xf32> -> vector<16x96xf32>
    %9 = arith.addf %3, %8 : vector<16x96xf32>
    %c0_6 = arith.constant 0 : index
    %c0_7 = arith.constant 0 : index
    %10 = vector.load %arg7[%c0_6, %c0_7] : memref<16x96xf32, #tpu.memory_space<vmem>>, vector<16x96xf32>
    tpu.vector_store %arg7[%c0_6, %c0_7], %9 {strides = array<i32>} : memref<16x96xf32, #tpu.memory_space<vmem>>, vector<16x96xf32>,
    %c0_i32_8 = arith.constant 0 : i32
    %11 = arith.cmpi eq, %arg2, %c0_i32_8 : i32
    %12 = arith.extui %11 : i1 to i32
    %c0_i32_9 = arith.constant 0 : i32
    %13 = arith.cmpi ne, %12, %c0_i32_9 : i32
    scf.if %13 {
      %c0_10 = arith.constant 0 : index
      %c0_11 = arith.constant 0 : index
      %14 = vector.load %arg7[%c0_10, %c0_11] : memref<16x96xf32, #tpu.memory_space<vmem>>, vector<16x96xf32>
      %c0_12 = arith.constant 0 : index
      %c0_13 = arith.constant 0 : index
      %15 = vector.load %arg5[%c0_12, %c0_13] : memref<1x96xf32, #tpu.memory_space<vmem>>, vector<1x96xf32>
      %16 = vector.broadcast %15 : vector<1x96xf32> to vector<16x96xf32>
      %17 = arith.addf %14, %16 : vector<16x96xf32>
      %c0_14 = arith.constant 0 : index
      %c0_15 = arith.constant 0 : index
      %18 = vector.load %arg6[%c0_14, %c0_15] : memref<16x96xf32, #tpu.memory_space<vmem>>, vector<16x96xf32>
      tpu.vector_store %arg6[%c0_14, %c0_15], %17 {strides = array<i32>} : memref<16x96xf32, #tpu.memory_space<vmem>>, vector<16x96xf32>,
    } else {
    }
    return
  }
  func.func @transform_0(%arg0: i32, %arg1: i32, %arg2: i32) -> (i32, i32) {
    %c0_i32 = arith.constant 0 : i32
    return %arg0, %arg2 : i32, i32
  }
  func.func @transform_1(%arg0: i32, %arg1: i32, %arg2: i32) -> (i32, i32) {
    %c0_i32 = arith.constant 0 : i32
    return %arg2, %arg1 : i32, i32
  }
  func.func @transform_2(%arg0: i32, %arg1: i32, %arg2: i32) -> (i32, i32) {
    %c0_i32 = arith.constant 0 : i32
    %c0_i32_0 = arith.constant 0 : i32
    return %c0_i32, %arg1 : i32, i32
  }
  func.func @transform_3(%arg0: i32, %arg1: i32, %arg2: i32) -> (i32, i32) {
    %c0_i32 = arith.constant 0 : i32
    return %arg0, %arg1 : i32, i32
  }
}

module attributes {stable_mosaic.version = 11 : i64} {
  func.func @_linear_res_ln_kernel(%arg0: i32, %arg1: memref<16x32xf32, #tpu.memory_space<vmem>>, %arg2: memref<32x32xf32, #tpu.memory_space<vmem>>, %arg3: memref<1x32xf32, #tpu.memory_space<vmem>>, %arg4: memref<16x32xf32, #tpu.memory_space<vmem>>, %arg5: memref<1x32xf32, #tpu.memory_space<vmem>>, %arg6: memref<1x32xf32, #tpu.memory_space<vmem>>, %arg7: memref<16x32xf32, #tpu.memory_space<vmem>>) attributes {dimension_semantics = [#tpu.dimension_semantics<parallel>], iteration_bounds = array<i64: 1>, scalar_prefetch = 0 : i64, scratch_operands = 0 : i64, tpu.core_type = #tpu.core_type<tc>, window_params = [{transform_indices = @transform_0, window_bounds = array<i64: 16, 32>}, {pipeline_mode = #tpu.pipeline_mode<synchronous>, transform_indices = @transform_1, window_bounds = array<i64: 32, 32>}, {pipeline_mode = #tpu.pipeline_mode<synchronous>, transform_indices = @transform_2, window_bounds = array<i64: 1, 32>}, {transform_indices = @transform_3, window_bounds = array<i64: 16, 32>}, {pipeline_mode = #tpu.pipeline_mode<synchronous>, transform_indices = @transform_4, window_bounds = array<i64: 1, 32>}, {pipeline_mode = #tpu.pipeline_mode<synchronous>, transform_indices = @transform_5, window_bounds = array<i64: 1, 32>}, {transform_indices = @transform_6, window_bounds = array<i64: 16, 32>}]} {
    %c0 = arith.constant 0 : index
    %c0_0 = arith.constant 0 : index
    %0 = vector.load %arg1[%c0, %c0_0] : memref<16x32xf32, #tpu.memory_space<vmem>>, vector<16x32xf32>
    %1 = arith.truncf %0 : vector<16x32xf32> to vector<16x32xbf16>
    %c0_1 = arith.constant 0 : index
    %c0_2 = arith.constant 0 : index
    %2 = vector.load %arg2[%c0_1, %c0_2] : memref<32x32xf32, #tpu.memory_space<vmem>>, vector<32x32xf32>
    %3 = arith.truncf %2 : vector<32x32xf32> to vector<32x32xbf16>
    %cst = arith.constant dense<0.000000e+00> : vector<16x32xf32>
    %4 = tpu.matmul %1, %3, %cst {dimension_numbers = #tpu.dot_dimension_numbers<[1], [0], [0], [1], [0, 0, 1, 1], [], []>} : vector<16x32xbf16>, vector<32x32xbf16>, vector<16x32xf32> -> vector<16x32xf32>
    %c0_3 = arith.constant 0 : index
    %c0_4 = arith.constant 0 : index
    %5 = vector.load %arg3[%c0_3, %c0_4] : memref<1x32xf32, #tpu.memory_space<vmem>>, vector<1x32xf32>
    %6 = vector.broadcast %5 : vector<1x32xf32> to vector<16x32xf32>
    %7 = arith.addf %4, %6 : vector<16x32xf32>
    %c0_5 = arith.constant 0 : index
    %c0_6 = arith.constant 0 : index
    %8 = vector.load %arg4[%c0_5, %c0_6] : memref<16x32xf32, #tpu.memory_space<vmem>>, vector<16x32xf32>
    %9 = arith.addf %7, %8 : vector<16x32xf32>
    %cst_7 = arith.constant dense<0.000000e+00> : vector<16xf32>
    %10 = vector.multi_reduction <add>, %9, %cst_7 [1] : vector<16x32xf32> to vector<16xf32>
    %11 = vector.shape_cast %10 : vector<16xf32> to vector<16x1xf32>
    %cst_8 = arith.constant 3.200000e+01 : f32
    %12 = vector.broadcast %cst_8 : f32 to vector<16x1xf32>
    %13 = arith.divf %11, %12 : vector<16x1xf32>
    %14 = vector.broadcast %13 : vector<16x1xf32> to vector<16x32xf32>
    %15 = arith.subf %9, %14 : vector<16x32xf32>
    %16 = arith.mulf %15, %15 : vector<16x32xf32>
    %cst_9 = arith.constant dense<0.000000e+00> : vector<16xf32>
    %17 = vector.multi_reduction <add>, %16, %cst_9 [1] : vector<16x32xf32> to vector<16xf32>
    %18 = vector.shape_cast %17 : vector<16xf32> to vector<16x1xf32>
    %cst_10 = arith.constant 3.200000e+01 : f32
    %19 = vector.broadcast %cst_10 : f32 to vector<16x1xf32>
    %20 = arith.divf %18, %19 : vector<16x1xf32>
    %cst_11 = arith.constant 9.99999974E-6 : f32
    %21 = vector.broadcast %cst_11 : f32 to vector<16x1xf32>
    %22 = arith.addf %20, %21 : vector<16x1xf32>
    %23 = math.rsqrt %22 : vector<16x1xf32>
    %24 = vector.broadcast %23 : vector<16x1xf32> to vector<16x32xf32>
    %25 = arith.mulf %15, %24 : vector<16x32xf32>
    %c0_12 = arith.constant 0 : index
    %c0_13 = arith.constant 0 : index
    %26 = vector.load %arg5[%c0_12, %c0_13] : memref<1x32xf32, #tpu.memory_space<vmem>>, vector<1x32xf32>
    %27 = vector.broadcast %26 : vector<1x32xf32> to vector<16x32xf32>
    %28 = arith.mulf %25, %27 : vector<16x32xf32>
    %c0_14 = arith.constant 0 : index
    %c0_15 = arith.constant 0 : index
    %29 = vector.load %arg6[%c0_14, %c0_15] : memref<1x32xf32, #tpu.memory_space<vmem>>, vector<1x32xf32>
    %30 = vector.broadcast %29 : vector<1x32xf32> to vector<16x32xf32>
    %31 = arith.addf %28, %30 : vector<16x32xf32>
    %c0_16 = arith.constant 0 : index
    %c0_17 = arith.constant 0 : index
    %32 = vector.load %arg7[%c0_16, %c0_17] : memref<16x32xf32, #tpu.memory_space<vmem>>, vector<16x32xf32>
    tpu.vector_store %arg7[%c0_16, %c0_17], %31 {strides = array<i32>} : memref<16x32xf32, #tpu.memory_space<vmem>>, vector<16x32xf32>,
    return
  }
  func.func @transform_0(%arg0: i32) -> (i32, i32) {
    %c0_i32 = arith.constant 0 : i32
    %c0_i32_0 = arith.constant 0 : i32
    return %arg0, %c0_i32 : i32, i32
  }
  func.func @transform_1(%arg0: i32) -> (i32, i32) {
    %c0_i32 = arith.constant 0 : i32
    %c0_i32_0 = arith.constant 0 : i32
    %c0_i32_1 = arith.constant 0 : i32
    return %c0_i32, %c0_i32_0 : i32, i32
  }
  func.func @transform_2(%arg0: i32) -> (i32, i32) {
    %c0_i32 = arith.constant 0 : i32
    %c0_i32_0 = arith.constant 0 : i32
    %c0_i32_1 = arith.constant 0 : i32
    return %c0_i32, %c0_i32_0 : i32, i32
  }
  func.func @transform_3(%arg0: i32) -> (i32, i32) {
    %c0_i32 = arith.constant 0 : i32
    %c0_i32_0 = arith.constant 0 : i32
    return %arg0, %c0_i32 : i32, i32
  }
  func.func @transform_4(%arg0: i32) -> (i32, i32) {
    %c0_i32 = arith.constant 0 : i32
    %c0_i32_0 = arith.constant 0 : i32
    %c0_i32_1 = arith.constant 0 : i32
    return %c0_i32, %c0_i32_0 : i32, i32
  }
  func.func @transform_5(%arg0: i32) -> (i32, i32) {
    %c0_i32 = arith.constant 0 : i32
    %c0_i32_0 = arith.constant 0 : i32
    %c0_i32_1 = arith.constant 0 : i32
    return %c0_i32, %c0_i32_0 : i32, i32
  }
  func.func @transform_6(%arg0: i32) -> (i32, i32) {
    %c0_i32 = arith.constant 0 : i32
    %c0_i32_0 = arith.constant 0 : i32
    return %arg0, %c0_i32 : i32, i32
  }
}

module attributes {stable_mosaic.version = 11 : i64} {
  func.func @_mha_kernel(%arg0: i32, %arg1: i32, %arg2: memref<1x8x32xf32, #tpu.memory_space<vmem>>, %arg3: memref<1x8x32xf32, #tpu.memory_space<vmem>>, %arg4: memref<1x8x32xf32, #tpu.memory_space<vmem>>, %arg5: memref<1x8x32xf32, #tpu.memory_space<vmem>>) attributes {dimension_semantics = [#tpu.dimension_semantics<parallel>, #tpu.dimension_semantics<parallel>], iteration_bounds = array<i64: 2, 1>, scalar_prefetch = 0 : i64, scratch_operands = 0 : i64, tpu.core_type = #tpu.core_type<tc>, window_params = [{transform_indices = @transform_0, window_bounds = array<i64: 1, 8, 32>}, {transform_indices = @transform_1, window_bounds = array<i64: 1, 8, 32>}, {transform_indices = @transform_2, window_bounds = array<i64: 1, 8, 32>}, {transform_indices = @transform_3, window_bounds = array<i64: 1, 8, 32>}]} {
    %c0 = arith.constant 0 : index
    %c0_0 = arith.constant 0 : index
    %c0_1 = arith.constant 0 : index
    %0 = vector.load %arg2[%c0, %c0_0, %c0_1] : memref<1x8x32xf32, #tpu.memory_space<vmem>>, vector<1x8x32xf32>
    %1 = vector.shape_cast %0 : vector<1x8x32xf32> to vector<8x32xf32>
    %cst = arith.constant 0.353553385 : f32
    %2 = vector.broadcast %cst : f32 to vector<8x32xf32>
    %3 = arith.mulf %1, %2 : vector<8x32xf32>
    %c0_2 = arith.constant 0 : index
    %c0_3 = arith.constant 0 : index
    %c0_4 = arith.constant 0 : index
    %4 = vector.load %arg3[%c0_2, %c0_3, %c0_4] : memref<1x8x32xf32, #tpu.memory_space<vmem>>, vector<1x8x32xf32>
    %5 = vector.shape_cast %4 : vector<1x8x32xf32> to vector<8x32xf32>
    %c0_5 = arith.constant 0 : index
    %c0_6 = arith.constant 0 : index
    %c0_7 = arith.constant 0 : index
    %6 = vector.load %arg4[%c0_5, %c0_6, %c0_7] : memref<1x8x32xf32, #tpu.memory_space<vmem>>, vector<1x8x32xf32>
    %7 = vector.shape_cast %6 : vector<1x8x32xf32> to vector<8x32xf32>
    %8 = vector.extract_strided_slice %3 {offsets = [0, 0], sizes = [8, 8], strides = [1, 1]} : vector<8x32xf32> to vector<8x8xf32>
    %9 = arith.truncf %8 : vector<8x8xf32> to vector<8x8xbf16>
    %10 = vector.extract_strided_slice %5 {offsets = [0, 0], sizes = [8, 8], strides = [1, 1]} : vector<8x32xf32> to vector<8x8xf32>
    %11 = arith.truncf %10 : vector<8x8xf32> to vector<8x8xbf16>
    %12 = vector.extract_strided_slice %7 {offsets = [0, 0], sizes = [8, 8], strides = [1, 1]} : vector<8x32xf32> to vector<8x8xf32>
    %13 = arith.truncf %12 : vector<8x8xf32> to vector<8x8xbf16>
    %cst_8 = arith.constant dense<0.000000e+00> : vector<8x8xf32>
    %14 = tpu.matmul %9, %11, %cst_8 {dimension_numbers = #tpu.dot_dimension_numbers<[1], [1], [0], [0], [0, 0, 1, 0], [], []>} : vector<8x8xbf16>, vector<8x8xbf16>, vector<8x8xf32> -> vector<8x8xf32>
    %cst_9 = arith.constant dense<0xFF800000> : vector<8xf32>
    %15 = vector.multi_reduction <maximumf>, %14, %cst_9 [1] : vector<8x8xf32> to vector<8xf32>
    %16 = vector.shape_cast %15 : vector<8xf32> to vector<8x1xf32>
    %17 = vector.broadcast %16 : vector<8x1xf32> to vector<8x8xf32>
    %18 = arith.subf %14, %17 : vector<8x8xf32>
    %19 = math.exp %18 : vector<8x8xf32>
    %cst_10 = arith.constant dense<0.000000e+00> : vector<8xf32>
    %20 = vector.multi_reduction <add>, %19, %cst_10 [1] : vector<8x8xf32> to vector<8xf32>
    %21 = vector.shape_cast %20 : vector<8xf32> to vector<8x1xf32>
    %22 = tpu.reciprocal %21 {approx = true} : vector<8x1xf32> -> vector<8x1xf32>
    %23 = vector.broadcast %22 : vector<8x1xf32> to vector<8x8xf32>
    %24 = arith.mulf %19, %23 : vector<8x8xf32>
    %25 = arith.truncf %24 : vector<8x8xf32> to vector<8x8xbf16>
    %cst_11 = arith.constant dense<0.000000e+00> : vector<8x8xf32>
    %26 = tpu.matmul %25, %13, %cst_11 {dimension_numbers = #tpu.dot_dimension_numbers<[1], [0], [0], [1], [0, 0, 1, 1], [], []>} : vector<8x8xbf16>, vector<8x8xbf16>, vector<8x8xf32> -> vector<8x8xf32>
    %27 = vector.extract_strided_slice %3 {offsets = [0, 8], sizes = [8, 8], strides = [1, 1]} : vector<8x32xf32> to vector<8x8xf32>
    %28 = arith.truncf %27 : vector<8x8xf32> to vector<8x8xbf16>
    %29 = vector.extract_strided_slice %5 {offsets = [0, 8], sizes = [8, 8], strides = [1, 1]} : vector<8x32xf32> to vector<8x8xf32>
    %30 = arith.truncf %29 : vector<8x8xf32> to vector<8x8xbf16>
    %31 = vector.extract_strided_slice %7 {offsets = [0, 8], sizes = [8, 8], strides = [1, 1]} : vector<8x32xf32> to vector<8x8xf32>
    %32 = arith.truncf %31 : vector<8x8xf32> to vector<8x8xbf16>
    %cst_12 = arith.constant dense<0.000000e+00> : vector<8x8xf32>
    %33 = tpu.matmul %28, %30, %cst_12 {dimension_numbers = #tpu.dot_dimension_numbers<[1], [1], [0], [0], [0, 0, 1, 0], [], []>} : vector<8x8xbf16>, vector<8x8xbf16>, vector<8x8xf32> -> vector<8x8xf32>
    %cst_13 = arith.constant dense<0xFF800000> : vector<8xf32>
    %34 = vector.multi_reduction <maximumf>, %33, %cst_13 [1] : vector<8x8xf32> to vector<8xf32>
    %35 = vector.shape_cast %34 : vector<8xf32> to vector<8x1xf32>
    %36 = vector.broadcast %35 : vector<8x1xf32> to vector<8x8xf32>
    %37 = arith.subf %33, %36 : vector<8x8xf32>
    %38 = math.exp %37 : vector<8x8xf32>
    %cst_14 = arith.constant dense<0.000000e+00> : vector<8xf32>
    %39 = vector.multi_reduction <add>, %38, %cst_14 [1] : vector<8x8xf32> to vector<8xf32>
    %40 = vector.shape_cast %39 : vector<8xf32> to vector<8x1xf32>
    %41 = tpu.reciprocal %40 {approx = true} : vector<8x1xf32> -> vector<8x1xf32>
    %42 = vector.broadcast %41 : vector<8x1xf32> to vector<8x8xf32>
    %43 = arith.mulf %38, %42 : vector<8x8xf32>
    %44 = arith.truncf %43 : vector<8x8xf32> to vector<8x8xbf16>
    %cst_15 = arith.constant dense<0.000000e+00> : vector<8x8xf32>
    %45 = tpu.matmul %44, %32, %cst_15 {dimension_numbers = #tpu.dot_dimension_numbers<[1], [0], [0], [1], [0, 0, 1, 1], [], []>} : vector<8x8xbf16>, vector<8x8xbf16>, vector<8x8xf32> -> vector<8x8xf32>
    %46 = vector.extract_strided_slice %3 {offsets = [0, 16], sizes = [8, 8], strides = [1, 1]} : vector<8x32xf32> to vector<8x8xf32>
    %47 = arith.truncf %46 : vector<8x8xf32> to vector<8x8xbf16>
    %48 = vector.extract_strided_slice %5 {offsets = [0, 16], sizes = [8, 8], strides = [1, 1]} : vector<8x32xf32> to vector<8x8xf32>
    %49 = arith.truncf %48 : vector<8x8xf32> to vector<8x8xbf16>
    %50 = vector.extract_strided_slice %7 {offsets = [0, 16], sizes = [8, 8], strides = [1, 1]} : vector<8x32xf32> to vector<8x8xf32>
    %51 = arith.truncf %50 : vector<8x8xf32> to vector<8x8xbf16>
    %cst_16 = arith.constant dense<0.000000e+00> : vector<8x8xf32>
    %52 = tpu.matmul %47, %49, %cst_16 {dimension_numbers = #tpu.dot_dimension_numbers<[1], [1], [0], [0], [0, 0, 1, 0], [], []>} : vector<8x8xbf16>, vector<8x8xbf16>, vector<8x8xf32> -> vector<8x8xf32>
    %cst_17 = arith.constant dense<0xFF800000> : vector<8xf32>
    %53 = vector.multi_reduction <maximumf>, %52, %cst_17 [1] : vector<8x8xf32> to vector<8xf32>
    %54 = vector.shape_cast %53 : vector<8xf32> to vector<8x1xf32>
    %55 = vector.broadcast %54 : vector<8x1xf32> to vector<8x8xf32>
    %56 = arith.subf %52, %55 : vector<8x8xf32>
    %57 = math.exp %56 : vector<8x8xf32>
    %cst_18 = arith.constant dense<0.000000e+00> : vector<8xf32>
    %58 = vector.multi_reduction <add>, %57, %cst_18 [1] : vector<8x8xf32> to vector<8xf32>
    %59 = vector.shape_cast %58 : vector<8xf32> to vector<8x1xf32>
    %60 = tpu.reciprocal %59 {approx = true} : vector<8x1xf32> -> vector<8x1xf32>
    %61 = vector.broadcast %60 : vector<8x1xf32> to vector<8x8xf32>
    %62 = arith.mulf %57, %61 : vector<8x8xf32>
    %63 = arith.truncf %62 : vector<8x8xf32> to vector<8x8xbf16>
    %cst_19 = arith.constant dense<0.000000e+00> : vector<8x8xf32>
    %64 = tpu.matmul %63, %51, %cst_19 {dimension_numbers = #tpu.dot_dimension_numbers<[1], [0], [0], [1], [0, 0, 1, 1], [], []>} : vector<8x8xbf16>, vector<8x8xbf16>, vector<8x8xf32> -> vector<8x8xf32>
    %65 = vector.extract_strided_slice %3 {offsets = [0, 24], sizes = [8, 8], strides = [1, 1]} : vector<8x32xf32> to vector<8x8xf32>
    %66 = arith.truncf %65 : vector<8x8xf32> to vector<8x8xbf16>
    %67 = vector.extract_strided_slice %5 {offsets = [0, 24], sizes = [8, 8], strides = [1, 1]} : vector<8x32xf32> to vector<8x8xf32>
    %68 = arith.truncf %67 : vector<8x8xf32> to vector<8x8xbf16>
    %69 = vector.extract_strided_slice %7 {offsets = [0, 24], sizes = [8, 8], strides = [1, 1]} : vector<8x32xf32> to vector<8x8xf32>
    %70 = arith.truncf %69 : vector<8x8xf32> to vector<8x8xbf16>
    %cst_20 = arith.constant dense<0.000000e+00> : vector<8x8xf32>
    %71 = tpu.matmul %66, %68, %cst_20 {dimension_numbers = #tpu.dot_dimension_numbers<[1], [1], [0], [0], [0, 0, 1, 0], [], []>} : vector<8x8xbf16>, vector<8x8xbf16>, vector<8x8xf32> -> vector<8x8xf32>
    %cst_21 = arith.constant dense<0xFF800000> : vector<8xf32>
    %72 = vector.multi_reduction <maximumf>, %71, %cst_21 [1] : vector<8x8xf32> to vector<8xf32>
    %73 = vector.shape_cast %72 : vector<8xf32> to vector<8x1xf32>
    %74 = vector.broadcast %73 : vector<8x1xf32> to vector<8x8xf32>
    %75 = arith.subf %71, %74 : vector<8x8xf32>
    %76 = math.exp %75 : vector<8x8xf32>
    %cst_22 = arith.constant dense<0.000000e+00> : vector<8xf32>
    %77 = vector.multi_reduction <add>, %76, %cst_22 [1] : vector<8x8xf32> to vector<8xf32>
    %78 = vector.shape_cast %77 : vector<8xf32> to vector<8x1xf32>
    %79 = tpu.reciprocal %78 {approx = true} : vector<8x1xf32> -> vector<8x1xf32>
    %80 = vector.broadcast %79 : vector<8x1xf32> to vector<8x8xf32>
    %81 = arith.mulf %76, %80 : vector<8x8xf32>
    %82 = arith.truncf %81 : vector<8x8xf32> to vector<8x8xbf16>
    %cst_23 = arith.constant dense<0.000000e+00> : vector<8x8xf32>
    %83 = tpu.matmul %82, %70, %cst_23 {dimension_numbers = #tpu.dot_dimension_numbers<[1], [0], [0], [1], [0, 0, 1, 1], [], []>} : vector<8x8xbf16>, vector<8x8xbf16>, vector<8x8xf32> -> vector<8x8xf32>
    %84 = tpu.concatenate %26, %45, %64, %83 in 1 : vector<8x8xf32>, vector<8x8xf32>, vector<8x8xf32>, vector<8x8xf32> -> vector<8x32xf32>
    %c0_24 = arith.constant 0 : index
    %c0_25 = arith.constant 0 : index
    %c0_26 = arith.constant 0 : index
    %85 = vector.load %arg5[%c0_24, %c0_25, %c0_26] : memref<1x8x32xf32, #tpu.memory_space<vmem>>, vector<1x8x32xf32>
    %86 = vector.shape_cast %85 : vector<1x8x32xf32> to vector<8x32xf32>
    %87 = vector.shape_cast %84 : vector<8x32xf32> to vector<1x8x32xf32>
    tpu.vector_store %arg5[%c0_24, %c0_25, %c0_26], %87 {strides = array<i32>} : memref<1x8x32xf32, #tpu.memory_space<vmem>>, vector<1x8x32xf32>,
    return
  }
  func.func @transform_0(%arg0: i32, %arg1: i32) -> (i32, i32, i32) {
    %c0_i32 = arith.constant 0 : i32
    %c0_i32_0 = arith.constant 0 : i32
    return %arg0, %arg1, %c0_i32 : i32, i32, i32
  }
  func.func @transform_1(%arg0: i32, %arg1: i32) -> (i32, i32, i32) {
    %c0_i32 = arith.constant 0 : i32
    %c0_i32_0 = arith.constant 0 : i32
    %c0_i32_1 = arith.constant 0 : i32
    return %arg0, %c0_i32, %c0_i32_0 : i32, i32, i32
  }
  func.func @transform_2(%arg0: i32, %arg1: i32) -> (i32, i32, i32) {
    %c0_i32 = arith.constant 0 : i32
    %c0_i32_0 = arith.constant 0 : i32
    %c0_i32_1 = arith.constant 0 : i32
    return %arg0, %c0_i32, %c0_i32_0 : i32, i32, i32
  }
  func.func @transform_3(%arg0: i32, %arg1: i32) -> (i32, i32, i32) {
    %c0_i32 = arith.constant 0 : i32
    %c0_i32_0 = arith.constant 0 : i32
    return %arg0, %arg1, %c0_i32 : i32, i32, i32
  }
}

module attributes {stable_mosaic.version = 11 : i64} {
  func.func @_matmul_bias_kernel(%arg0: i32, %arg1: i32, %arg2: i32, %arg3: memref<16x32xf32, #tpu.memory_space<vmem>>, %arg4: memref<32x32xf32, #tpu.memory_space<vmem>>, %arg5: memref<1x32xf32, #tpu.memory_space<vmem>>, %arg6: memref<16x32xf32, #tpu.memory_space<vmem>>, %arg7: memref<16x32xf32, #tpu.memory_space<vmem>>) attributes {dimension_semantics = [#tpu.dimension_semantics<parallel>, #tpu.dimension_semantics<parallel>, #tpu.dimension_semantics<arbitrary>], iteration_bounds = array<i64: 1, 1, 1>, scalar_prefetch = 0 : i64, scratch_operands = 1 : i64, tpu.core_type = #tpu.core_type<tc>, window_params = [{transform_indices = @transform_0, window_bounds = array<i64: 16, 32>}, {transform_indices = @transform_1, window_bounds = array<i64: 32, 32>}, {transform_indices = @transform_2, window_bounds = array<i64: 1, 32>}, {transform_indices = @transform_3, window_bounds = array<i64: 16, 32>}]} {
    %c0_i32 = arith.constant 0 : i32
    %0 = arith.cmpi eq, %arg2, %c0_i32 : i32
    %1 = arith.extui %0 : i1 to i32
    %c0_i32_0 = arith.constant 0 : i32
    %2 = arith.cmpi ne, %1, %c0_i32_0 : i32
    scf.if %2 {
      %cst_10 = arith.constant 0.000000e+00 : f32
      %14 = vector.broadcast %cst_10 : f32 to vector<16x32xf32>
      %c0_11 = arith.constant 0 : index
      %c0_12 = arith.constant 0 : index
      %15 = vector.load %arg7[%c0_11, %c0_12] : memref<16x32xf32, #tpu.memory_space<vmem>>, vector<16x32xf32>
      tpu.vector_store %arg7[%c0_11, %c0_12], %14 {strides = array<i32>} : memref<16x32xf32, #tpu.memory_space<vmem>>, vector<16x32xf32>,
    } else {
    }
    %c0 = arith.constant 0 : index
    %c0_1 = arith.constant 0 : index
    %3 = vector.load %arg7[%c0, %c0_1] : memref<16x32xf32, #tpu.memory_space<vmem>>, vector<16x32xf32>
    %c0_2 = arith.constant 0 : index
    %c0_3 = arith.constant 0 : index
    %4 = vector.load %arg3[%c0_2, %c0_3] : memref<16x32xf32, #tpu.memory_space<vmem>>, vector<16x32xf32>
    %5 = arith.truncf %4 : vector<16x32xf32> to vector<16x32xbf16>
    %c0_4 = arith.constant 0 : index
    %c0_5 = arith.constant 0 : index
    %6 = vector.load %arg4[%c0_4, %c0_5] : memref<32x32xf32, #tpu.memory_space<vmem>>, vector<32x32xf32>
    %7 = arith.truncf %6 : vector<32x32xf32> to vector<32x32xbf16>
    %cst = arith.constant dense<0.000000e+00> : vector<16x32xf32>
    %8 = tpu.matmul %5, %7, %cst {dimension_numbers = #tpu.dot_dimension_numbers<[1], [0], [0], [1], [0, 0, 1, 1], [], []>} : vector<16x32xbf16>, vector<32x32xbf16>, vector<16x32xf32> -> vector<16x32xf32>
    %9 = arith.addf %3, %8 : vector<16x32xf32>
    %c0_6 = arith.constant 0 : index
    %c0_7 = arith.constant 0 : index
    %10 = vector.load %arg7[%c0_6, %c0_7] : memref<16x32xf32, #tpu.memory_space<vmem>>, vector<16x32xf32>
    tpu.vector_store %arg7[%c0_6, %c0_7], %9 {strides = array<i32>} : memref<16x32xf32, #tpu.memory_space<vmem>>, vector<16x32xf32>,
    %c0_i32_8 = arith.constant 0 : i32
    %11 = arith.cmpi eq, %arg2, %c0_i32_8 : i32
    %12 = arith.extui %11 : i1 to i32
    %c0_i32_9 = arith.constant 0 : i32
    %13 = arith.cmpi ne, %12, %c0_i32_9 : i32
    scf.if %13 {
      %c0_10 = arith.constant 0 : index
      %c0_11 = arith.constant 0 : index
      %14 = vector.load %arg7[%c0_10, %c0_11] : memref<16x32xf32, #tpu.memory_space<vmem>>, vector<16x32xf32>
      %c0_12 = arith.constant 0 : index
      %c0_13 = arith.constant 0 : index
      %15 = vector.load %arg5[%c0_12, %c0_13] : memref<1x32xf32, #tpu.memory_space<vmem>>, vector<1x32xf32>
      %16 = vector.broadcast %15 : vector<1x32xf32> to vector<16x32xf32>
      %17 = arith.addf %14, %16 : vector<16x32xf32>
      %c0_14 = arith.constant 0 : index
      %c0_15 = arith.constant 0 : index
      %18 = vector.load %arg6[%c0_14, %c0_15] : memref<16x32xf32, #tpu.memory_space<vmem>>, vector<16x32xf32>
      tpu.vector_store %arg6[%c0_14, %c0_15], %17 {strides = array<i32>} : memref<16x32xf32, #tpu.memory_space<vmem>>, vector<16x32xf32>,
    } else {
    }
    return
  }
  func.func @transform_0(%arg0: i32, %arg1: i32, %arg2: i32) -> (i32, i32) {
    %c0_i32 = arith.constant 0 : i32
    return %arg0, %arg2 : i32, i32
  }
  func.func @transform_1(%arg0: i32, %arg1: i32, %arg2: i32) -> (i32, i32) {
    %c0_i32 = arith.constant 0 : i32
    return %arg2, %arg1 : i32, i32
  }
  func.func @transform_2(%arg0: i32, %arg1: i32, %arg2: i32) -> (i32, i32) {
    %c0_i32 = arith.constant 0 : i32
    %c0_i32_0 = arith.constant 0 : i32
    return %c0_i32, %arg1 : i32, i32
  }
  func.func @transform_3(%arg0: i32, %arg1: i32, %arg2: i32) -> (i32, i32) {
    %c0_i32 = arith.constant 0 : i32
    return %arg0, %arg1 : i32, i32
  }
}

module attributes {stable_mosaic.version = 11 : i64} {
  func.func @_matmul_bias_kernel(%arg0: i32, %arg1: i32, %arg2: i32, %arg3: memref<16x32xf32, #tpu.memory_space<vmem>>, %arg4: memref<32x64xf32, #tpu.memory_space<vmem>>, %arg5: memref<1x64xf32, #tpu.memory_space<vmem>>, %arg6: memref<16x64xf32, #tpu.memory_space<vmem>>, %arg7: memref<16x64xf32, #tpu.memory_space<vmem>>) attributes {dimension_semantics = [#tpu.dimension_semantics<parallel>, #tpu.dimension_semantics<parallel>, #tpu.dimension_semantics<arbitrary>], iteration_bounds = array<i64: 1, 1, 1>, scalar_prefetch = 0 : i64, scratch_operands = 1 : i64, tpu.core_type = #tpu.core_type<tc>, window_params = [{transform_indices = @transform_0, window_bounds = array<i64: 16, 32>}, {transform_indices = @transform_1, window_bounds = array<i64: 32, 64>}, {transform_indices = @transform_2, window_bounds = array<i64: 1, 64>}, {transform_indices = @transform_3, window_bounds = array<i64: 16, 64>}]} {
    %c0_i32 = arith.constant 0 : i32
    %0 = arith.cmpi eq, %arg2, %c0_i32 : i32
    %1 = arith.extui %0 : i1 to i32
    %c0_i32_0 = arith.constant 0 : i32
    %2 = arith.cmpi ne, %1, %c0_i32_0 : i32
    scf.if %2 {
      %cst_10 = arith.constant 0.000000e+00 : f32
      %14 = vector.broadcast %cst_10 : f32 to vector<16x64xf32>
      %c0_11 = arith.constant 0 : index
      %c0_12 = arith.constant 0 : index
      %15 = vector.load %arg7[%c0_11, %c0_12] : memref<16x64xf32, #tpu.memory_space<vmem>>, vector<16x64xf32>
      tpu.vector_store %arg7[%c0_11, %c0_12], %14 {strides = array<i32>} : memref<16x64xf32, #tpu.memory_space<vmem>>, vector<16x64xf32>,
    } else {
    }
    %c0 = arith.constant 0 : index
    %c0_1 = arith.constant 0 : index
    %3 = vector.load %arg7[%c0, %c0_1] : memref<16x64xf32, #tpu.memory_space<vmem>>, vector<16x64xf32>
    %c0_2 = arith.constant 0 : index
    %c0_3 = arith.constant 0 : index
    %4 = vector.load %arg3[%c0_2, %c0_3] : memref<16x32xf32, #tpu.memory_space<vmem>>, vector<16x32xf32>
    %5 = arith.truncf %4 : vector<16x32xf32> to vector<16x32xbf16>
    %c0_4 = arith.constant 0 : index
    %c0_5 = arith.constant 0 : index
    %6 = vector.load %arg4[%c0_4, %c0_5] : memref<32x64xf32, #tpu.memory_space<vmem>>, vector<32x64xf32>
    %7 = arith.truncf %6 : vector<32x64xf32> to vector<32x64xbf16>
    %cst = arith.constant dense<0.000000e+00> : vector<16x64xf32>
    %8 = tpu.matmul %5, %7, %cst {dimension_numbers = #tpu.dot_dimension_numbers<[1], [0], [0], [1], [0, 0, 1, 1], [], []>} : vector<16x32xbf16>, vector<32x64xbf16>, vector<16x64xf32> -> vector<16x64xf32>
    %9 = arith.addf %3, %8 : vector<16x64xf32>
    %c0_6 = arith.constant 0 : index
    %c0_7 = arith.constant 0 : index
    %10 = vector.load %arg7[%c0_6, %c0_7] : memref<16x64xf32, #tpu.memory_space<vmem>>, vector<16x64xf32>
    tpu.vector_store %arg7[%c0_6, %c0_7], %9 {strides = array<i32>} : memref<16x64xf32, #tpu.memory_space<vmem>>, vector<16x64xf32>,
    %c0_i32_8 = arith.constant 0 : i32
    %11 = arith.cmpi eq, %arg2, %c0_i32_8 : i32
    %12 = arith.extui %11 : i1 to i32
    %c0_i32_9 = arith.constant 0 : i32
    %13 = arith.cmpi ne, %12, %c0_i32_9 : i32
    scf.if %13 {
      %c0_10 = arith.constant 0 : index
      %c0_11 = arith.constant 0 : index
      %14 = vector.load %arg7[%c0_10, %c0_11] : memref<16x64xf32, #tpu.memory_space<vmem>>, vector<16x64xf32>
      %c0_12 = arith.constant 0 : index
      %c0_13 = arith.constant 0 : index
      %15 = vector.load %arg5[%c0_12, %c0_13] : memref<1x64xf32, #tpu.memory_space<vmem>>, vector<1x64xf32>
      %16 = vector.broadcast %15 : vector<1x64xf32> to vector<16x64xf32>
      %17 = arith.addf %14, %16 : vector<16x64xf32>
      %c0_14 = arith.constant 0 : index
      %c0_15 = arith.constant 0 : index
      %18 = vector.load %arg6[%c0_14, %c0_15] : memref<16x64xf32, #tpu.memory_space<vmem>>, vector<16x64xf32>
      tpu.vector_store %arg6[%c0_14, %c0_15], %17 {strides = array<i32>} : memref<16x64xf32, #tpu.memory_space<vmem>>, vector<16x64xf32>,
    } else {
    }
    return
  }
  func.func @transform_0(%arg0: i32, %arg1: i32, %arg2: i32) -> (i32, i32) {
    %c0_i32 = arith.constant 0 : i32
    return %arg0, %arg2 : i32, i32
  }
  func.func @transform_1(%arg0: i32, %arg1: i32, %arg2: i32) -> (i32, i32) {
    %c0_i32 = arith.constant 0 : i32
    return %arg2, %arg1 : i32, i32
  }
  func.func @transform_2(%arg0: i32, %arg1: i32, %arg2: i32) -> (i32, i32) {
    %c0_i32 = arith.constant 0 : i32
    %c0_i32_0 = arith.constant 0 : i32
    return %c0_i32, %arg1 : i32, i32
  }
  func.func @transform_3(%arg0: i32, %arg1: i32, %arg2: i32) -> (i32, i32) {
    %c0_i32 = arith.constant 0 : i32
    return %arg0, %arg1 : i32, i32
  }
}

module attributes {stable_mosaic.version = 11 : i64} {
  func.func @_ffn_res_ln_kernel(%arg0: i32, %arg1: memref<16x32xf32, #tpu.memory_space<vmem>>, %arg2: memref<32x64xf32, #tpu.memory_space<vmem>>, %arg3: memref<1x64xf32, #tpu.memory_space<vmem>>, %arg4: memref<64x32xf32, #tpu.memory_space<vmem>>, %arg5: memref<1x32xf32, #tpu.memory_space<vmem>>, %arg6: memref<1x32xf32, #tpu.memory_space<vmem>>, %arg7: memref<1x32xf32, #tpu.memory_space<vmem>>, %arg8: memref<16x32xf32, #tpu.memory_space<vmem>>) attributes {dimension_semantics = [#tpu.dimension_semantics<parallel>], iteration_bounds = array<i64: 1>, scalar_prefetch = 0 : i64, scratch_operands = 0 : i64, tpu.core_type = #tpu.core_type<tc>, window_params = [{transform_indices = @transform_0, window_bounds = array<i64: 16, 32>}, {pipeline_mode = #tpu.pipeline_mode<synchronous>, transform_indices = @transform_1, window_bounds = array<i64: 32, 64>}, {pipeline_mode = #tpu.pipeline_mode<synchronous>, transform_indices = @transform_2, window_bounds = array<i64: 1, 64>}, {pipeline_mode = #tpu.pipeline_mode<synchronous>, transform_indices = @transform_3, window_bounds = array<i64: 64, 32>}, {pipeline_mode = #tpu.pipeline_mode<synchronous>, transform_indices = @transform_4, window_bounds = array<i64: 1, 32>}, {pipeline_mode = #tpu.pipeline_mode<synchronous>, transform_indices = @transform_5, window_bounds = array<i64: 1, 32>}, {pipeline_mode = #tpu.pipeline_mode<synchronous>, transform_indices = @transform_6, window_bounds = array<i64: 1, 32>}, {transform_indices = @transform_7, window_bounds = array<i64: 16, 32>}]} {
    %c0 = arith.constant 0 : index
    %c0_0 = arith.constant 0 : index
    %0 = vector.load %arg1[%c0, %c0_0] : memref<16x32xf32, #tpu.memory_space<vmem>>, vector<16x32xf32>
    %1 = arith.truncf %0 : vector<16x32xf32> to vector<16x32xbf16>
    %c0_1 = arith.constant 0 : index
    %c0_2 = arith.constant 0 : index
    %2 = vector.load %arg2[%c0_1, %c0_2] : memref<32x64xf32, #tpu.memory_space<vmem>>, vector<32x64xf32>
    %3 = arith.truncf %2 : vector<32x64xf32> to vector<32x64xbf16>
    %cst = arith.constant dense<0.000000e+00> : vector<16x64xf32>
    %4 = tpu.matmul %1, %3, %cst {dimension_numbers = #tpu.dot_dimension_numbers<[1], [0], [0], [1], [0, 0, 1, 1], [], []>} : vector<16x32xbf16>, vector<32x64xbf16>, vector<16x64xf32> -> vector<16x64xf32>
    %c0_3 = arith.constant 0 : index
    %c0_4 = arith.constant 0 : index
    %5 = vector.load %arg3[%c0_3, %c0_4] : memref<1x64xf32, #tpu.memory_space<vmem>>, vector<1x64xf32>
    %6 = vector.broadcast %5 : vector<1x64xf32> to vector<16x64xf32>
    %7 = arith.addf %4, %6 : vector<16x64xf32>
    %cst_5 = arith.constant 0.000000e+00 : f32
    %8 = vector.broadcast %cst_5 : f32 to vector<16x64xf32>
    %9 = arith.maximumf %7, %8 : vector<16x64xf32>
    %10 = arith.truncf %9 : vector<16x64xf32> to vector<16x64xbf16>
    %c0_6 = arith.constant 0 : index
    %c0_7 = arith.constant 0 : index
    %11 = vector.load %arg4[%c0_6, %c0_7] : memref<64x32xf32, #tpu.memory_space<vmem>>, vector<64x32xf32>
    %12 = arith.truncf %11 : vector<64x32xf32> to vector<64x32xbf16>
    %cst_8 = arith.constant dense<0.000000e+00> : vector<16x32xf32>
    %13 = tpu.matmul %10, %12, %cst_8 {dimension_numbers = #tpu.dot_dimension_numbers<[1], [0], [0], [1], [0, 0, 1, 1], [], []>} : vector<16x64xbf16>, vector<64x32xbf16>, vector<16x32xf32> -> vector<16x32xf32>
    %c0_9 = arith.constant 0 : index
    %c0_10 = arith.constant 0 : index
    %14 = vector.load %arg5[%c0_9, %c0_10] : memref<1x32xf32, #tpu.memory_space<vmem>>, vector<1x32xf32>
    %15 = vector.broadcast %14 : vector<1x32xf32> to vector<16x32xf32>
    %16 = arith.addf %13, %15 : vector<16x32xf32>
    %17 = arith.addf %0, %16 : vector<16x32xf32>
    %cst_11 = arith.constant dense<0.000000e+00> : vector<16xf32>
    %18 = vector.multi_reduction <add>, %17, %cst_11 [1] : vector<16x32xf32> to vector<16xf32>
    %19 = vector.shape_cast %18 : vector<16xf32> to vector<16x1xf32>
    %cst_12 = arith.constant 3.200000e+01 : f32
    %20 = vector.broadcast %cst_12 : f32 to vector<16x1xf32>
    %21 = arith.divf %19, %20 : vector<16x1xf32>
    %22 = vector.broadcast %21 : vector<16x1xf32> to vector<16x32xf32>
    %23 = arith.subf %17, %22 : vector<16x32xf32>
    %24 = arith.mulf %23, %23 : vector<16x32xf32>
    %cst_13 = arith.constant dense<0.000000e+00> : vector<16xf32>
    %25 = vector.multi_reduction <add>, %24, %cst_13 [1] : vector<16x32xf32> to vector<16xf32>
    %26 = vector.shape_cast %25 : vector<16xf32> to vector<16x1xf32>
    %cst_14 = arith.constant 3.200000e+01 : f32
    %27 = vector.broadcast %cst_14 : f32 to vector<16x1xf32>
    %28 = arith.divf %26, %27 : vector<16x1xf32>
    %cst_15 = arith.constant 9.99999974E-6 : f32
    %29 = vector.broadcast %cst_15 : f32 to vector<16x1xf32>
    %30 = arith.addf %28, %29 : vector<16x1xf32>
    %31 = math.rsqrt %30 : vector<16x1xf32>
    %32 = vector.broadcast %31 : vector<16x1xf32> to vector<16x32xf32>
    %33 = arith.mulf %23, %32 : vector<16x32xf32>
    %c0_16 = arith.constant 0 : index
    %c0_17 = arith.constant 0 : index
    %34 = vector.load %arg6[%c0_16, %c0_17] : memref<1x32xf32, #tpu.memory_space<vmem>>, vector<1x32xf32>
    %35 = vector.broadcast %34 : vector<1x32xf32> to vector<16x32xf32>
    %36 = arith.mulf %33, %35 : vector<16x32xf32>
    %c0_18 = arith.constant 0 : index
    %c0_19 = arith.constant 0 : index
    %37 = vector.load %arg7[%c0_18, %c0_19] : memref<1x32xf32, #tpu.memory_space<vmem>>, vector<1x32xf32>
    %38 = vector.broadcast %37 : vector<1x32xf32> to vector<16x32xf32>
    %39 = arith.addf %36, %38 : vector<16x32xf32>
    %c0_20 = arith.constant 0 : index
    %c0_21 = arith.constant 0 : index
    %40 = vector.load %arg8[%c0_20, %c0_21] : memref<16x32xf32, #tpu.memory_space<vmem>>, vector<16x32xf32>
    tpu.vector_store %arg8[%c0_20, %c0_21], %39 {strides = array<i32>} : memref<16x32xf32, #tpu.memory_space<vmem>>, vector<16x32xf32>,
    return
  }
  func.func @transform_0(%arg0: i32) -> (i32, i32) {
    %c0_i32 = arith.constant 0 : i32
    %c0_i32_0 = arith.constant 0 : i32
    return %arg0, %c0_i32 : i32, i32
  }
  func.func @transform_1(%arg0: i32) -> (i32, i32) {
    %c0_i32 = arith.constant 0 : i32
    %c0_i32_0 = arith.constant 0 : i32
    %c0_i32_1 = arith.constant 0 : i32
    return %c0_i32, %c0_i32_0 : i32, i32
  }
  func.func @transform_2(%arg0: i32) -> (i32, i32) {
    %c0_i32 = arith.constant 0 : i32
    %c0_i32_0 = arith.constant 0 : i32
    %c0_i32_1 = arith.constant 0 : i32
    return %c0_i32, %c0_i32_0 : i32, i32
  }
  func.func @transform_3(%arg0: i32) -> (i32, i32) {
    %c0_i32 = arith.constant 0 : i32
    %c0_i32_0 = arith.constant 0 : i32
    %c0_i32_1 = arith.constant 0 : i32
    return %c0_i32, %c0_i32_0 : i32, i32
  }
  func.func @transform_4(%arg0: i32) -> (i32, i32) {
    %c0_i32 = arith.constant 0 : i32
    %c0_i32_0 = arith.constant 0 : i32
    %c0_i32_1 = arith.constant 0 : i32
    return %c0_i32, %c0_i32_0 : i32, i32
  }
  func.func @transform_5(%arg0: i32) -> (i32, i32) {
    %c0_i32 = arith.constant 0 : i32
    %c0_i32_0 = arith.constant 0 : i32
    %c0_i32_1 = arith.constant 0 : i32
    return %c0_i32, %c0_i32_0 : i32, i32
  }
  func.func @transform_6(%arg0: i32) -> (i32, i32) {
    %c0_i32 = arith.constant 0 : i32
    %c0_i32_0 = arith.constant 0 : i32
    %c0_i32_1 = arith.constant 0 : i32
    return %c0_i32, %c0_i32_0 : i32, i32
  }
  func.func @transform_7(%arg0: i32) -> (i32, i32) {
    %c0_i32 = arith.constant 0 : i32
    %c0_i32_0 = arith.constant 0 : i32
    return %arg0, %c0_i32 : i32, i32
  }
}

module attributes {stable_mosaic.version = 11 : i64} {
  func.func @_matmul_bias_kernel(%arg0: i32, %arg1: i32, %arg2: i32, %arg3: memref<16x32xf32, #tpu.memory_space<vmem>>, %arg4: memref<32x16xf32, #tpu.memory_space<vmem>>, %arg5: memref<1x16xf32, #tpu.memory_space<vmem>>, %arg6: memref<16x16xf32, #tpu.memory_space<vmem>>, %arg7: memref<16x16xf32, #tpu.memory_space<vmem>>) attributes {dimension_semantics = [#tpu.dimension_semantics<parallel>, #tpu.dimension_semantics<parallel>, #tpu.dimension_semantics<arbitrary>], iteration_bounds = array<i64: 1, 1, 1>, scalar_prefetch = 0 : i64, scratch_operands = 1 : i64, tpu.core_type = #tpu.core_type<tc>, window_params = [{transform_indices = @transform_0, window_bounds = array<i64: 16, 32>}, {transform_indices = @transform_1, window_bounds = array<i64: 32, 16>}, {transform_indices = @transform_2, window_bounds = array<i64: 1, 16>}, {transform_indices = @transform_3, window_bounds = array<i64: 16, 16>}]} {
    %c0_i32 = arith.constant 0 : i32
    %0 = arith.cmpi eq, %arg2, %c0_i32 : i32
    %1 = arith.extui %0 : i1 to i32
    %c0_i32_0 = arith.constant 0 : i32
    %2 = arith.cmpi ne, %1, %c0_i32_0 : i32
    scf.if %2 {
      %cst_10 = arith.constant 0.000000e+00 : f32
      %14 = vector.broadcast %cst_10 : f32 to vector<16x16xf32>
      %c0_11 = arith.constant 0 : index
      %c0_12 = arith.constant 0 : index
      %15 = vector.load %arg7[%c0_11, %c0_12] : memref<16x16xf32, #tpu.memory_space<vmem>>, vector<16x16xf32>
      tpu.vector_store %arg7[%c0_11, %c0_12], %14 {strides = array<i32>} : memref<16x16xf32, #tpu.memory_space<vmem>>, vector<16x16xf32>,
    } else {
    }
    %c0 = arith.constant 0 : index
    %c0_1 = arith.constant 0 : index
    %3 = vector.load %arg7[%c0, %c0_1] : memref<16x16xf32, #tpu.memory_space<vmem>>, vector<16x16xf32>
    %c0_2 = arith.constant 0 : index
    %c0_3 = arith.constant 0 : index
    %4 = vector.load %arg3[%c0_2, %c0_3] : memref<16x32xf32, #tpu.memory_space<vmem>>, vector<16x32xf32>
    %5 = arith.truncf %4 : vector<16x32xf32> to vector<16x32xbf16>
    %c0_4 = arith.constant 0 : index
    %c0_5 = arith.constant 0 : index
    %6 = vector.load %arg4[%c0_4, %c0_5] : memref<32x16xf32, #tpu.memory_space<vmem>>, vector<32x16xf32>
    %7 = arith.truncf %6 : vector<32x16xf32> to vector<32x16xbf16>
    %cst = arith.constant dense<0.000000e+00> : vector<16x16xf32>
    %8 = tpu.matmul %5, %7, %cst {dimension_numbers = #tpu.dot_dimension_numbers<[1], [0], [0], [1], [0, 0, 1, 1], [], []>} : vector<16x32xbf16>, vector<32x16xbf16>, vector<16x16xf32> -> vector<16x16xf32>
    %9 = arith.addf %3, %8 : vector<16x16xf32>
    %c0_6 = arith.constant 0 : index
    %c0_7 = arith.constant 0 : index
    %10 = vector.load %arg7[%c0_6, %c0_7] : memref<16x16xf32, #tpu.memory_space<vmem>>, vector<16x16xf32>
    tpu.vector_store %arg7[%c0_6, %c0_7], %9 {strides = array<i32>} : memref<16x16xf32, #tpu.memory_space<vmem>>, vector<16x16xf32>,
    %c0_i32_8 = arith.constant 0 : i32
    %11 = arith.cmpi eq, %arg2, %c0_i32_8 : i32
    %12 = arith.extui %11 : i1 to i32
    %c0_i32_9 = arith.constant 0 : i32
    %13 = arith.cmpi ne, %12, %c0_i32_9 : i32
    scf.if %13 {
      %c0_10 = arith.constant 0 : index
      %c0_11 = arith.constant 0 : index
      %14 = vector.load %arg7[%c0_10, %c0_11] : memref<16x16xf32, #tpu.memory_space<vmem>>, vector<16x16xf32>
      %c0_12 = arith.constant 0 : index
      %c0_13 = arith.constant 0 : index
      %15 = vector.load %arg5[%c0_12, %c0_13] : memref<1x16xf32, #tpu.memory_space<vmem>>, vector<1x16xf32>
      %16 = vector.broadcast %15 : vector<1x16xf32> to vector<16x16xf32>
      %17 = arith.addf %14, %16 : vector<16x16xf32>
      %c0_14 = arith.constant 0 : index
      %c0_15 = arith.constant 0 : index
      %18 = vector.load %arg6[%c0_14, %c0_15] : memref<16x16xf32, #tpu.memory_space<vmem>>, vector<16x16xf32>
      tpu.vector_store %arg6[%c0_14, %c0_15], %17 {strides = array<i32>} : memref<16x16xf32, #tpu.memory_space<vmem>>, vector<16x16xf32>,
    } else {
    }
    return
  }
  func.func @transform_0(%arg0: i32, %arg1: i32, %arg2: i32) -> (i32, i32) {
    %c0_i32 = arith.constant 0 : i32
    return %arg0, %arg2 : i32, i32
  }
  func.func @transform_1(%arg0: i32, %arg1: i32, %arg2: i32) -> (i32, i32) {
    %c0_i32 = arith.constant 0 : i32
    return %arg2, %arg1 : i32, i32
  }
  func.func @transform_2(%arg0: i32, %arg1: i32, %arg2: i32) -> (i32, i32) {
    %c0_i32 = arith.constant 0 : i32
    %c0_i32_0 = arith.constant 0 : i32
    return %c0_i32, %arg1 : i32, i32
  }
  func.func @transform_3(%arg0: i32, %arg1: i32, %arg2: i32) -> (i32, i32) {
    %c0_i32 = arith.constant 0 : i32
    return %arg0, %arg1 : i32, i32
  }
}

</mosaic_0001>

<bundles_post_ra>
// kernel: decoder_forward.19
= control target key start
LH: loop header
LB: loop body
LE: loop exit
PB: predicated region body
PF: predicated region fallthrough
CT: control target
= control target key end

     0   :  { %v161_v0 = vmov 0.0   ;;  %vm162_vm0 = vmmov 0   ;;  %vm40_vm1 = vcmask 261120   ;;  %s244_s1 = inlined_call_operand.vmem [shape: f32[32,32], index: 1, kind: input, shape index: {}]   ;;  %s245_s0 = inlined_call_operand.vmem [shape: f32[16,32], index: 0, kind: input, shape index: {}]   ;;  %s246_s2 = inlined_call_operand.vmem [shape: f32[1,32], index: 2, kind: input, shape index: {}]   ;;  %s247_s3 = inlined_call_operand.vmem [shape: f32[16,32], index: 3, kind: input, shape index: {}]   ;;  %s248_s4 = inlined_call_operand.vmem [shape: f32[1,32], index: 4, kind: input, shape index: {}]   ;;  %s249_s5 = inlined_call_operand.vmem [shape: f32[1,32], index: 5, kind: input, shape index: {}]   ;;  %s250_s6 = inlined_call_operand.vmem [shape: f32[16,32], index: 6, kind: output, shape index: {}]  }
   0x1   :  { %147 = vmatprep.subr.bf16.mxu0 %v161_v0  ;;  %v27_v1 = vld [vmem:[%s244_s1] sm:$0xff]  ;;  %v28_v2 = vld [vmem:[%s244_s1 + $0x8] sm:$0xff]  ;;  %v29_v3 = vld [vmem:[%s244_s1 + $0x10] sm:$0xff]  ;;  %151 = vmatprep.mubr.msk.bf16.mxu0 %vm162_vm0, %v161_v0 }
   0x2   :  { %v31_v4 = vpack.c.bf16 %v28_v2, %v27_v1  ;;  %v30_v5 = vld [vmem:[%s244_s1 + $0x18] sm:$0xff]  ;;  %v24_v7 = vld [vmem:[%s245_s0] sm:$0xff]  ;;  %v25_v8 = vld [vmem:[%s245_s0 + $0x8] sm:$0xff] }
   0x3   :  { %v32_v6 = vpack.c.bf16 %v30_v5, %v29_v3  ;;  %v26_v9 = vpack.c.bf16 %v25_v8, %v24_v7  ;;  %v140_v10 = vld [vmem:[%s246_s2] ss:$0 sm:$0xff]  ;;  %v86_v16 = vld [vmem:[%s247_s3 + $0x8] sm:$0xff] }
   0x4   :  { %148 = vmatpush3.bf16.msra.mxu0 %v31_v4  ;;  %v85_v12 = vld [vmem:[%s247_s3] sm:$0xff] }
   0x5   :  { %149 = vmatprep.subr.bf16.mxu0 %v161_v0  ;;  %v142_v40 = vld [vmem:[%s248_s4] ss:$0 sm:$0xff] }
   0x6   :  { %v143_v42 = vld [vmem:[%s249_s5] ss:$0 sm:$0xff] }
   0x8   :  { %150 = vmatpush3.bf16.msra.mxu0 %v32_v6 }
   0xb   :  { %152 = vmatmul.mubr.msk.bf16.vlgmr.msra.gmra.mrb[0].mxu0 %vm40_vm1, %v26_v9 }
  0xde   :  { %v78_v11 = vpop.f32.mrb[0].mxu0 }
  0xdf   :  { %v79_v13 = vadd.f32 %v140_v10, %v78_v11  ;;  %v153_v14 = vpop.f32.mrb[1].mxu0 }
  0xe0   :  { %v81_v15 = vpop.f32.mrb[2].mxu0 }
  0xe1   :  { %v82_v17 = vadd.f32 %v140_v10, %v81_v15  ;;  %v154_v18 = vpop.f32.mrb[3].mxu0  ;;  %v87_v19 = vadd.f32 %v85_v12, %v79_v13 }
  0xe3   :  { %v89_v20 = vsel %vm40_vm1, %v87_v19, 0.0  ;;  %v88_v21 = vadd.f32 %v86_v16, %v82_v17 }
  0xe4   :  { %90 = vadd.xlane.f32.xlu0 %v89_v20 }
  0xe5   :  { %v92_v22 = vsel %vm40_vm1, %v88_v21, 0.0 }
  0xe8   :  { %93 = vadd.xlane.f32.xlu0 %v92_v22 }
 0x171   :  { %v91_v23 = vpop.xlane.xlu0 %90 }
 0x172   :  { %v96_v24 = vmul.f32 0.03125, %v91_v23 }
 0x174   :  { %v98_v25 = vsub.f32 %v87_v19, %v96_v24 }
 0x175   :  { %v94_v26 = vpop.xlane.xlu0 %93 }
 0x176   :  { %v97_v27 = vmul.f32 0.03125, %v94_v26  ;;  %v100_v28 = vmul.f32 %v98_v25, %v98_v25 }
 0x178   :  { %v99_v29 = vsub.f32 %v88_v21, %v97_v27  ;;  %v102_v30 = vsel %vm40_vm1, %v100_v28, 0.0 }
 0x179   :  { %103 = vadd.xlane.f32.xlu1 %v102_v30 }
 0x17a   :  { %v101_v31 = vmul.f32 %v99_v29, %v99_v29 }
 0x17c   :  { %v105_v32 = vsel %vm40_vm1, %v101_v31, 0.0 }
 0x17d   :  { %106 = vadd.xlane.f32.xlu1 %v105_v32 }
 0x206   :  { %v104_v33 = vpop.xlane.xlu1 %103 }
 0x207   :  { %v108_v34 = vmul.f32 0.03125, %v104_v33 }
 0x209   :  { %v110_v35 = vadd.f32 1e-05, %v108_v34 }
 0x20a   :  { %v107_v36 = vpop.xlane.xlu1 %106 }
 0x20b   :  { %157 = vrsqrt.f32 %v110_v35  ;;  %v109_v37 = vmul.f32 0.03125, %v107_v36 }
 0x20d   :  { %v111_v38 = vadd.f32 1e-05, %v109_v37 }
 0x20f   :  { %159 = vrsqrt.f32 %v111_v38 }
 0x215   :  { %v158_v39 = vpop.eup %157 }
 0x216   :  { %v114_v41 = vmul.f32 %v158_v39, %v98_v25 }
 0x218   :  { %v123_v43 = vmul.f32 %v142_v40, %v114_v41 }
 0x219   :  { %v160_v44 = vpop.eup %159 }
 0x21a   :  { %v132_v45 = vadd.f32 %v143_v42, %v123_v43  ;;  %v115_v46 = vmul.f32 %v160_v44, %v99_v29 }
 0x21c   :  { %134 = vst.msk [vmem:[%s250_s6] sm:$0xff] %vm40_vm1, %v132_v45  ;;  %v124_v47 = vmul.f32 %v142_v40, %v115_v46 }
 0x21e   :  { %v133_v48 = vadd.f32 %v143_v42, %v124_v47 }
 0x220   :  { %135 = vst.msk [vmem:[%s250_s6 + $0x8] sm:$0xff] %vm40_vm1, %v133_v48 }

// kernel: decoder_forward.17
= control target key start
LH: loop header
LB: loop body
LE: loop exit
PB: predicated region body
PF: predicated region fallthrough
CT: control target
= control target key end

     0   :  { %vm19_vm0 = vcmask 785408   ;;  %v118_v0 = vmov 0.0   ;;  %vm119_vm1 = vmmov 0   ;;  %vm33_vm2 = vcmask 261120   ;;  %s173_s1 = inlined_call_operand.vmem [shape: f32[32,96], index: 1, kind: input, shape index: {}]   ;;  %s174_s0 = inlined_call_operand.vmem [shape: f32[16,32], index: 0, kind: input, shape index: {}]   ;;  %s175_s2 = inlined_call_operand.vmem [shape: f32[1,96], index: 2, kind: input, shape index: {}]   ;;  %s176_s3 = inlined_call_operand.vmem [shape: f32[16,96], index: 3, kind: output, shape index: {}]  }
   0x1   :  { %108 = vmatprep.subr.bf16.mxu0 %v118_v0  ;;  %v27_v1 = vld [vmem:[%s173_s1] sm:$0xff]  ;;  %v28_v2 = vld [vmem:[%s173_s1 + $0x8] sm:$0xff]  ;;  %v29_v3 = vld [vmem:[%s173_s1 + $0x10] sm:$0xff]  ;;  %112 = vmatprep.mubr.msk.bf16.mxu0 %vm119_vm1, %v118_v0  ;;  %20 = vst.msk [vmem:[#allocation2] sm:$0xff] %vm19_vm0, %v118_v0 }
   0x2   :  { %21 = vst.msk [vmem:[#allocation2 + $0x8] sm:$0xff] %vm19_vm0, %v118_v0  ;;  %v31_v4 = vpack.c.bf16 %v28_v2, %v27_v1  ;;  %v30_v5 = vld [vmem:[%s173_s1 + $0x18] sm:$0xff]  ;;  %v24_v7 = vld [vmem:[%s174_s0] sm:$0xff]  ;;  %v25_v8 = vld [vmem:[%s174_s0 + $0x8] sm:$0xff] }
   0x3   :  { %v32_v6 = vpack.c.bf16 %v30_v5, %v29_v3  ;;  %v26_v9 = vpack.c.bf16 %v25_v8, %v24_v7  ;;  %v104_v18 = vld [vmem:[%s175_s2] ss:$0 sm:$0xff] }
   0x4   :  { %109 = vmatpush3.bf16.msra.mxu0 %v31_v4 }
   0x5   :  { %110 = vmatprep.subr.bf16.mxu0 %v118_v0 }
   0x8   :  { %111 = vmatpush3.bf16.msra.mxu0 %v32_v6  ;;  %v22_v10 = vld [vmem:[#allocation2] sm:$0xff] }
   0x9   :  { %v23_v12 = vld [vmem:[#allocation2 + $0x8] sm:$0xff] }
   0xb   :  { %113 = vmatmul.mubr.msk.bf16.vlgmr.msra.gmra.mrb[0].mxu0 %vm33_vm2, %v26_v9 }
  0xde   :  { %v71_v11 = vpop.f32.mrb[0].mxu0 }
  0xdf   :  { %v78_v13 = vadd.f32 %v71_v11, %v22_v10  ;;  %v114_v14 = vpop.f32.mrb[1].mxu0 }
  0xe0   :  { %v74_v15 = vpop.f32.mrb[2].mxu0 }
  0xe1   :  { %81 = vst.msk [vmem:[#allocation2] sm:$0xff] %vm19_vm0, %v78_v13  ;;  %v79_v16 = vadd.f32 %v74_v15, %v23_v12  ;;  %v115_v17 = vpop.f32.mrb[3].mxu0 }
  0xe3   :  { %82 = vst.msk [vmem:[#allocation2 + $0x8] sm:$0xff] %vm19_vm0, %v79_v16 }
  0xe8   :  { %v86_v19 = vld [vmem:[#allocation2] sm:$0xff] }
  0xe9   :  { %v95_v20 = vadd.f32 %v104_v18, %v86_v19 }
  0xea   :  { %v87_v21 = vld [vmem:[#allocation2 + $0x8] sm:$0xff] }
  0xeb   :  { %97 = vst.msk [vmem:[%s176_s3] sm:$0xff] %vm19_vm0, %v95_v20  ;;  %v96_v22 = vadd.f32 %v104_v18, %v87_v21 }
  0xed   :  { %98 = vst.msk [vmem:[%s176_s3 + $0x8] sm:$0xff] %vm19_vm0, %v96_v22 }

// kernel: decoder_forward.20
= control target key start
LH: loop header
LB: loop body
LE: loop exit
PB: predicated region body
PF: predicated region fallthrough
CT: control target
= control target key end

     0   :  { %vm19_vm0 = vcmask 261120   ;;  %v117_v0 = vmov 0.0   ;;  %vm118_vm1 = vmmov 0   ;;  %s173_s1 = inlined_call_operand.vmem [shape: f32[32,32], index: 1, kind: input, shape index: {}]   ;;  %s174_s0 = inlined_call_operand.vmem [shape: f32[16,32], index: 0, kind: input, shape index: {}]   ;;  %s175_s2 = inlined_call_operand.vmem [shape: f32[1,32], index: 2, kind: input, shape index: {}]   ;;  %s176_s3 = inlined_call_operand.vmem [shape: f32[16,32], index: 3, kind: output, shape index: {}]  }
   0x1   :  { %107 = vmatprep.subr.bf16.mxu0 %v117_v0  ;;  %v27_v1 = vld [vmem:[%s173_s1] sm:$0xff]  ;;  %v28_v2 = vld [vmem:[%s173_s1 + $0x8] sm:$0xff]  ;;  %v29_v3 = vld [vmem:[%s173_s1 + $0x10] sm:$0xff]  ;;  %111 = vmatprep.mubr.msk.bf16.mxu0 %vm118_vm1, %v117_v0  ;;  %20 = vst.msk [vmem:[#allocation2] sm:$0xff] %vm19_vm0, %v117_v0 }
   0x2   :  { %21 = vst.msk [vmem:[#allocation2 + $0x8] sm:$0xff] %vm19_vm0, %v117_v0  ;;  %v31_v4 = vpack.c.bf16 %v28_v2, %v27_v1  ;;  %v30_v5 = vld [vmem:[%s173_s1 + $0x18] sm:$0xff]  ;;  %v24_v7 = vld [vmem:[%s174_s0] sm:$0xff]  ;;  %v25_v8 = vld [vmem:[%s174_s0 + $0x8] sm:$0xff] }
   0x3   :  { %v32_v6 = vpack.c.bf16 %v30_v5, %v29_v3  ;;  %v26_v9 = vpack.c.bf16 %v25_v8, %v24_v7  ;;  %v103_v18 = vld [vmem:[%s175_s2] ss:$0 sm:$0xff] }
   0x4   :  { %108 = vmatpush3.bf16.msra.mxu0 %v31_v4 }
   0x5   :  { %109 = vmatprep.subr.bf16.mxu0 %v117_v0 }
   0x8   :  { %110 = vmatpush3.bf16.msra.mxu0 %v32_v6  ;;  %v22_v10 = vld [vmem:[#allocation2] sm:$0xff] }
   0x9   :  { %v23_v12 = vld [vmem:[#allocation2 + $0x8] sm:$0xff] }
   0xb   :  { %112 = vmatmul.mubr.msk.bf16.vlgmr.msra.gmra.mrb[0].mxu0 %vm19_vm0, %v26_v9 }
  0xde   :  { %v71_v11 = vpop.f32.mrb[0].mxu0 }
  0xdf   :  { %v78_v13 = vadd.f32 %v71_v11, %v22_v10  ;;  %v113_v14 = vpop.f32.mrb[1].mxu0 }
  0xe0   :  { %v74_v15 = vpop.f32.mrb[2].mxu0 }
  0xe1   :  { %80 = vst.msk [vmem:[#allocation2] sm:$0xff] %vm19_vm0, %v78_v13  ;;  %v79_v16 = vadd.f32 %v74_v15, %v23_v12  ;;  %v114_v17 = vpop.f32.mrb[3].mxu0 }
  0xe3   :  { %81 = vst.msk [vmem:[#allocation2 + $0x8] sm:$0xff] %vm19_vm0, %v79_v16 }
  0xe8   :  { %v85_v19 = vld [vmem:[#allocation2] sm:$0xff] }
  0xe9   :  { %v94_v20 = vadd.f32 %v103_v18, %v85_v19 }
  0xea   :  { %v86_v21 = vld [vmem:[#allocation2 + $0x8] sm:$0xff] }
  0xeb   :  { %96 = vst.msk [vmem:[%s176_s3] sm:$0xff] %vm19_vm0, %v94_v20  ;;  %v95_v22 = vadd.f32 %v103_v18, %v86_v21 }
  0xed   :  { %97 = vst.msk [vmem:[%s176_s3 + $0x8] sm:$0xff] %vm19_vm0, %v95_v22 }

// kernel: decoder_forward.18
= control target key start
LH: loop header
LB: loop body
LE: loop exit
PB: predicated region body
PF: predicated region fallthrough
CT: control target
= control target key end

     0   :  { %s978_s12 = smov 0   ;;  %s980_s13 = smov 0   ;;  %s1090_s0 = inlined_call_operand.vmem [shape: f32[2,8,32], index: 0, kind: input, shape index: {}]   ;;  %s1091_s1 = inlined_call_operand.vmem [shape: f32[2,8,32], index: 1, kind: input, shape index: {}]   ;;  %s1092_s2 = inlined_call_operand.vmem [shape: f32[2,8,32], index: 2, kind: input, shape index: {}]   ;;  %s1093_s3 = inlined_call_operand.vmem [shape: f32[2,8,32], index: 3, kind: output, shape index: {}]  }
   0x1   :  { %s982_s14 = smov 0  }
   0x2 LB: > { %s25_s15 = sadd.s32 1, %s944_s13  ;;  %p799_p0 = scmp.ge.s32.totalorder %s948_s14, 1  ;;  %s948_s14 = sphi %s982_s14, %s13_s14   ;;  %s944_s13 = sphi %s980_s13, %s1095_s13   ;;  %s940_s12 = sphi %s978_s12, %s1094_s12  }
   0x3   : > { %p27_p1 = scmp.ge.s32.totalorder %s25_s15, 2  ;;  %p173_p2 = scmp.lt.s32.totalorder %s948_s14, 3 }
   0x5   : > { %s1097_s15 = smov (%p27_p1, %s25_s15), 0  ;;  %p174_p3 = pnand %p799_p0, %p173_p2 }
   0x6   : > { %p209_p4 = scmp.lt.s32.totalorder (!%p174_p3), %s940_s12, 1  ;;  %v950_v0 = vmov (!%p174_p3), 0.0   ;;  %vm951_vm0 = vmmov (!%p174_p3), 0   ;;  %vm239_vm1 = vcmask (!%p174_p3), 64512   ;;  %s952_s23 = smov (!%p174_p3), 120   ;;  %vm301_vm2 = vcmask (!%p174_p3), 1043456  }
   0x7   : > { %177 = sbr.rel (%p174_p3) target bundleno = 1474 (0x5c2), region = 32  ;;  %830 = vmatprep.subr.bf16.mxu0 (!%p174_p3), %v950_v0  ;;  %832 = vmatprep.mubr.msk.bf16.mxu0 (!%p174_p3), %vm951_vm0, %v950_v0  ;;  %s953_s24 = smov (!%p174_p3), 112   ;;  %vm691_vm3 = vcmask (!%p174_p3), 130048   ;;  %vm693_vm4 = vcmask (!%p174_p3), 195584   ;;  %vm695_vm5 = vcmask (!%p174_p3), 261120  }
   0x8   : > { %836 = vmatprep.subr.bf16.mxu1 (!%p174_p3), %v950_v0  ;;  %838 = vmatprep.mubr.msk.bf16.mxu1 (!%p174_p3), %vm951_vm0, %v950_v0  ;;  %s954_s25 = smov (!%p174_p3), 104   ;;  %s955_s29 = smov (!%p174_p3), 8  }
   0x9   : > { %s956_s30 = smov (!%p174_p3), 16   ;;  %s957_s4 = smov (!%p174_p3), 24  }
   0xe   : > { %s1099_s12 = smov (!%p209_p4, %s940_s12), 1 }
   0xf   : > { %s1002_s16 = sshll.u32 %s1099_s12, 3 }
  0x10   : > { %s219_s19 = scalar_lea.vmem %s1091_s1, %s1002_s16  ;;  %s215_s22 = scalar_lea.vmem %s1090_s0, %s1002_s16 }
  0x11   : > { %v234_v1 = vld [vmem:[%s219_s19] sm:$0xff]  ;;  %s223_s28 = scalar_lea.vmem %s1092_s2, %s1002_s16  ;;  %s230_s7 = scalar_lea.vmem %s1093_s3, %s1002_s16 }
  0x12   : > { %v232_v2 = vld [vmem:[%s215_s22] sm:$0xff]  ;;  %v237_v3 = vpack.c.bf16 %v234_v1, %v234_v1 }
  0x13   : > { %v233_v5 = vmul.f32 0.35355338, %v232_v2  ;;  %v235_v17 = vld [vmem:[%s223_s28] sm:$0xff] }
  0x14   : > { %v244_v4 = vsel %vm239_vm1, %v237_v3, 0  ;;  %349 = vrot.lane.b32.xlu1 %v237_v3, %s952_s23  ;;  %v1028_v18 = vpack.c.bf16 %v235_v17, %v235_v17 }
  0x15   : > { %831 = vmatpush3.bf16.xpose.msra.mxu0 %v244_v4  ;;  %v236_v6 = vpack.c.bf16 %v233_v5, %v233_v5 }
  0x16   : > { %848 = vmatprep.subr.bf16.mxu0 %v950_v0  ;;  %v303_v19 = vsel %vm301_vm2, %v1028_v18, 0 }
  0x17   : > { %837 = vmatpush3.bf16.msra.mxu1 %v303_v19 }
  0x18   : > { %346 = vrot.lane.b32.xlu1 %v236_v6, %s952_s23  ;;  %842 = vmatprep.subr.bf16.mxu1 %v950_v0 }
  0x1c   : > { %833 = vmatmul.mubr.msk.bf16.vlgmr.msra.gmra.mrb[0].mxu0 %vm239_vm1, %v236_v6  ;;  %458 = vrot.lane.b32.xlu1 %v236_v6, %s953_s24 }
  0x1d   : > { %850 = vmatprep.mubr.msk.bf16.mxu0 %vm951_vm0, %v950_v0 }
  0x20   : > { %570 = vrot.lane.b32.xlu1 %v237_v3, %s954_s25 }
  0x24   : > { %568 = vrot.lane.b32.xlu1 %v236_v6, %s954_s25 }
  0x86   : > { %v350_v22 = vpop.permute.xlu1 %349 }
  0x87   : > { %v355_v24 = vsel %vm239_vm1, %v350_v22, 0 }
  0x8a   : > { %v347_v26 = vpop.permute.xlu1 %346 }
  0x8e   : > { %v459_v28 = vpop.permute.xlu1 %458 }
  0x92   : > { %v571_v30 = vpop.permute.xlu1 %570 }
  0x93   : > { %v576_v31 = vsel %vm239_vm1, %v571_v30, 0 }
  0x96   : > { %v569_v32 = vpop.permute.xlu1 %568 }
  0xef   : > { %v280_v7 = vpop.f32.mrb[0].mxu0 }
  0xf0   : > { %v834_v8 = vpop.f32.mrb[1].mxu0  ;;  %v286_v9 = vsel %vm239_vm1, %v280_v7, -inf }
  0xf1   : > { %287 = vmax.xlane.f32.xlu0 %v286_v9  ;;  %v283_v10 = vpop.f32.mrb[2].mxu0 }
  0xf2   : > { %v835_v11 = vpop.f32.mrb[3].mxu0 }
 0x17e   : > { %v288_v12 = vpop.xlane.xlu0 %287 }
 0x17f   : > { %v289_v13 = vsub.f32 %v280_v7, %v288_v12 }
 0x181   : > { %v290_v14 = vmul.f32 1.442695, %v289_v13 }
 0x183   : > { %910 = vpow2.f32 %v290_v14 }
 0x18d   : > { %v911_v15 = vpop.eup %910 }
 0x18e   : > { %v292_v16 = vsel %vm239_vm1, %v911_v15, 0.0 }
 0x18f   : > { %293 = vadd.xlane.f32.xlu0 %v292_v16 }
 0x1a5   : > { %460 = vrot.lane.b32.xlu0 %v237_v3, %s953_s24 }
 0x21c   : > { %v294_v20 = vpop.xlane.xlu0 %293 }
 0x21d   : > { %912 = vrcp.f32 %v294_v20 }
 0x220   : > { %v461_v27 = vpop.permute.xlu0 %460 }
 0x221   : > { %v466_v29 = vsel %vm239_vm1, %v461_v27, 0 }
 0x227   : > { %v913_v21 = vpop.eup %912 }
 0x228   : > { %v296_v23 = vmul.f32 %v913_v21, %v911_v15 }
 0x22a   : > { %v297_v25 = vpack.c.bf16 %v296_v23, %v296_v23 }
 0x22c   : > { %839 = vmatmul.mubr.msk.bf16.vlgmr.msra.gmra.mrb[0].mxu1 %vm239_vm1, %v297_v25 }
 0x22d   : > { %843 = vmatpush3.bf16.xpose.msra.mxu1 %v355_v24  ;;  %844 = vmatprep.mubr.msk.bf16.mxu1 %vm951_vm0, %v950_v0 }
 0x22e   : > { %854 = vmatprep.subr.bf16.mxu1 %v950_v0 }
 0x234   : > { %845 = vmatmul.mubr.msk.bf16.vlgmr.msra.gmra.mrb[4].mxu1 %vm239_vm1, %v347_v26 }
 0x235   : > { %855 = vmatpush3.bf16.xpose.msra.mxu1 %v466_v29  ;;  %856 = vmatprep.mubr.msk.bf16.mxu1 %vm951_vm0, %v950_v0 }
 0x236   : > { %866 = vmatprep.subr.bf16.mxu1 %v950_v0 }
 0x23c   : > { %857 = vmatmul.mubr.msk.bf16.vlgmr.msra.gmra.mrb[8].mxu1 %vm239_vm1, %v459_v28 }
 0x23d   : > { %867 = vmatpush3.bf16.xpose.msra.mxu1 %v576_v31  ;;  %868 = vmatprep.mubr.msk.bf16.mxu1 %vm951_vm0, %v950_v0 }
 0x244   : > { %869 = vmatmul.mubr.msk.bf16.vlgmr.msra.gmra.mrb[12].mxu1 %vm239_vm1, %v569_v32 }
 0x2ff   : > { %v1049_v33 = vpop.f32.mrb[0].mxu1 }
 0x300   : > { %v840_v34 = vpop.f32.mrb[1].mxu1 }
 0x301   : > { %v342_v35 = vpop.f32.mrb[2].mxu1 }
 0x302   : > { %v841_v36 = vpop.f32.mrb[3].mxu1 }
 0x307   : > { %v391_v37 = vpop.f32.mrb[4].mxu1 }
 0x308   : > { %v846_v38 = vpop.f32.mrb[5].mxu1  ;;  %v397_v39 = vsel %vm239_vm1, %v391_v37, -inf }
 0x309   : > { %398 = vmax.xlane.f32.xlu1 %v397_v39  ;;  %v394_v40 = vpop.f32.mrb[6].mxu1 }
 0x30a   : > { %v847_v41 = vpop.f32.mrb[7].mxu1 }
 0x30f   : > { %v502_v42 = vpop.f32.mrb[8].mxu1 }
 0x310   : > { %v508_v43 = vsel %vm239_vm1, %v502_v42, -inf  ;;  %v858_v44 = vpop.f32.mrb[9].mxu1 }
 0x311   : > { %509 = vmax.xlane.f32.xlu0 %v508_v43  ;;  %v505_v45 = vpop.f32.mrb[10].mxu1 }
 0x312   : > { %v859_v46 = vpop.f32.mrb[11].mxu1 }
 0x317   : > { %v612_v47 = vpop.f32.mrb[12].mxu1 }
 0x318   : > { %v618_v48 = vsel %vm239_vm1, %v612_v47, -inf  ;;  %v870_v49 = vpop.f32.mrb[13].mxu1 }
 0x319   : > { %619 = vmax.xlane.f32.xlu1 %v618_v48  ;;  %v615_v50 = vpop.f32.mrb[14].mxu1 }
 0x31a   : > { %v871_v51 = vpop.f32.mrb[15].mxu1 }
 0x396   : > { %v399_v52 = vpop.xlane.xlu1 %398 }
 0x397   : > { %v400_v53 = vsub.f32 %v391_v37, %v399_v52 }
 0x399   : > { %v401_v54 = vmul.f32 1.442695, %v400_v53 }
 0x39b   : > { %914 = vpow2.f32 %v401_v54 }
 0x39e   : > { %v510_v55 = vpop.xlane.xlu0 %509 }
 0x39f   : > { %v511_v56 = vsub.f32 %v502_v42, %v510_v55 }
 0x3a1   : > { %v512_v57 = vmul.f32 1.442695, %v511_v56 }
 0x3a3   : > { %916 = vpow2.f32 %v512_v57 }
 0x3a5   : > { %v915_v58 = vpop.eup %914 }
 0x3a6   : > { %v403_v59 = vsel %vm239_vm1, %v915_v58, 0.0  ;;  %v620_v62 = vpop.xlane.xlu1 %619 }
 0x3a7   : > { %404 = vadd.xlane.f32.xlu1 %v403_v59  ;;  %v621_v63 = vsub.f32 %v612_v47, %v620_v62 }
 0x3a9   : > { %v622_v1 = vmul.f32 1.442695, %v621_v63 }
 0x3ab   : > { %918 = vpow2.f32 %v622_v1 }
 0x3ad   : > { %v917_v60 = vpop.eup %916 }
 0x3ae   : > { %v514_v61 = vsel %vm239_vm1, %v917_v60, 0.0 }
 0x3af   : > { %515 = vadd.xlane.f32.xlu0 %v514_v61 }
 0x3b5   : > { %v919_v2 = vpop.eup %918 }
 0x3b6   : > { %v624_v3 = vsel %vm239_vm1, %v919_v2, 0.0 }
 0x3b8   : > { %520 = vrot.lane.b32.xlu1 %v1028_v18, %s953_s24 }
 0x3c5   : > { %410 = vrot.lane.b32.xlu0 %v1028_v18, %s952_s23 }
 0x3dc   : > { %625 = vadd.xlane.f32.xlu1 %v624_v3 }
 0x3ed   : > { %630 = vrot.lane.b32.xlu1 %v1028_v18, %s954_s25 }
 0x434   : > { %v405_v4 = vpop.xlane.xlu1 %404 }
 0x435   : > { %920 = vrcp.f32 %v405_v4 }
 0x438   : > { %v521_v10 = vpop.permute.xlu1 %520 }
 0x439   : > { %v526_v12 = vsel %vm301_vm2, %v521_v10, 0 }
 0x43c   : > { %v516_v5 = vpop.xlane.xlu0 %515 }
 0x43d   : > { %922 = vrcp.f32 %v516_v5 }
 0x43f   : > { %v921_v6 = vpop.eup %920 }
 0x440   : > { %v407_v7 = vmul.f32 %v921_v6, %v915_v58  ;;  %v411_v8 = vpop.permute.xlu0 %410 }
 0x441   : > { %v416_v9 = vsel %vm301_vm2, %v411_v8, 0 }
 0x442   : > { %849 = vmatpush3.bf16.msra.mxu0 %v416_v9  ;;  %v408_v11 = vpack.c.bf16 %v407_v7, %v407_v7 }
 0x443   : > { %860 = vmatprep.subr.bf16.mxu0 %v950_v0 }
 0x445   : > { %851 = vmatmul.mubr.msk.bf16.vlgmr.msra.gmra.mrb[4].mxu0 %vm239_vm1, %v408_v11 }
 0x446   : > { %861 = vmatpush3.bf16.msra.mxu0 %v526_v12  ;;  %862 = vmatprep.mubr.msk.bf16.mxu0 %vm951_vm0, %v950_v0 }
 0x447   : > { %v923_v13 = vpop.eup %922  ;;  %872 = vmatprep.subr.bf16.mxu0 %v950_v0 }
 0x448   : > { %v518_v14 = vmul.f32 %v923_v13, %v917_v60 }
 0x44a   : > { %v519_v15 = vpack.c.bf16 %v518_v14, %v518_v14 }
 0x44d   : > { %863 = vmatmul.mubr.msk.bf16.vlgmr.msra.gmra.mrb[8].mxu0 %vm239_vm1, %v519_v15 }
 0x44e   : > { %874 = vmatprep.mubr.msk.bf16.mxu0 %vm951_vm0, %v950_v0 }
 0x469   : > { %v626_v16 = vpop.xlane.xlu1 %625 }
 0x46a   : > { %924 = vrcp.f32 %v626_v16 }
 0x46d   : > { %v631_v17 = vpop.permute.xlu1 %630 }
 0x46e   : > { %v636_v18 = vsel %vm301_vm2, %v631_v17, 0 }
 0x46f   : > { %873 = vmatpush3.bf16.msra.mxu0 %v636_v18 }
 0x474   : > { %v925_v19 = vpop.eup %924 }
 0x475   : > { %v628_v20 = vmul.f32 %v925_v19, %v919_v2 }
 0x477   : > { %v629_v21 = vpack.c.bf16 %v628_v20, %v628_v20 }
 0x479   : > { %875 = vmatmul.mubr.msk.bf16.vlgmr.msra.gmra.mrb[12].mxu0 %vm239_vm1, %v629_v21 }
 0x518   : > { %v452_v22 = vpop.f32.mrb[4].mxu0 }
 0x519   : > { %679 = vrot.lane.b32.xlu0 %v452_v22, %s955_s29  ;;  %v852_v23 = vpop.f32.mrb[5].mxu0 }
 0x51a   : > { %v455_v24 = vpop.f32.mrb[6].mxu0 }
 0x51b   : > { %v853_v25 = vpop.f32.mrb[7].mxu0 }
 0x520   : > { %v562_v26 = vpop.f32.mrb[8].mxu0 }
 0x521   : > { %683 = vrot.lane.b32.xlu1 %v562_v26, %s956_s30  ;;  %v864_v0 = vpop.f32.mrb[9].mxu0 }
 0x522   : > { %v565_v27 = vpop.f32.mrb[10].mxu0 }
 0x523   : > { %v865_v28 = vpop.f32.mrb[11].mxu0 }
 0x54c   : > { %v672_v29 = vpop.f32.mrb[12].mxu0 }
 0x54d   : > { %687 = vrot.lane.b32.xlu0 %v672_v29, %s957_s4  ;;  %v876_v30 = vpop.f32.mrb[13].mxu0 }
 0x54e   : > { %v675_v31 = vpop.f32.mrb[14].mxu0 }
 0x54f   : > { %v877_v32 = vpop.f32.mrb[15].mxu0 }
 0x58b   : > { %v680_v34 = vpop.permute.xlu0 %679 }
 0x58c   : > { %v690_v36 = vsel %vm239_vm1, %v1049_v33, %v680_v34 }
 0x593   : > { %v684_v35 = vpop.permute.xlu1 %683 }
 0x594   : > { %v692_v37 = vsel %vm691_vm3, %v690_v36, %v684_v35 }
 0x5bf   : > { %v688_v38 = vpop.permute.xlu0 %687 }
 0x5c0   : > { %v694_v39 = vsel %vm693_vm4, %v692_v37, %v688_v38 }
 0x5c1   : > { %696 = vst.msk [vmem:[%s230_s7] sm:$0xff] %vm695_vm5, %v694_v39 }
 0x5c2 PF: > { %s13_s14 = sadd.s32 1, %s948_s14   ;;  %s1094_s12 = smov %s944_s13 }
 0x5c3   : > { %p10_p5 = scmp.ge.s32.totalorder %s13_s14, 4   ;;  %s1095_s13 = smov %s1097_s15 }
 0x5c5   :  { %12 = sbr.rel (!%p10_p5) target bundleno = 2 (0x2), region = 68 }

// kernel: decoder_forward.21
= control target key start
LH: loop header
LB: loop body
LE: loop exit
PB: predicated region body
PF: predicated region fallthrough
CT: control target
= control target key end

     0   :  { %vm19_vm0 = vcmask 523264   ;;  %v118_v0 = vmov 0.0   ;;  %vm119_vm1 = vmmov 0   ;;  %vm33_vm2 = vcmask 261120   ;;  %s173_s1 = inlined_call_operand.vmem [shape: f32[32,64], index: 1, kind: input, shape index: {}]   ;;  %s174_s0 = inlined_call_operand.vmem [shape: f32[16,32], index: 0, kind: input, shape index: {}]   ;;  %s175_s2 = inlined_call_operand.vmem [shape: f32[1,64], index: 2, kind: input, shape index: {}]   ;;  %s176_s3 = inlined_call_operand.vmem [shape: f32[16,64], index: 3, kind: output, shape index: {}]  }
   0x1   :  { %108 = vmatprep.subr.bf16.mxu0 %v118_v0  ;;  %v27_v1 = vld [vmem:[%s173_s1] sm:$0xff]  ;;  %v28_v2 = vld [vmem:[%s173_s1 + $0x8] sm:$0xff]  ;;  %v29_v3 = vld [vmem:[%s173_s1 + $0x10] sm:$0xff]  ;;  %112 = vmatprep.mubr.msk.bf16.mxu0 %vm119_vm1, %v118_v0  ;;  %20 = vst.msk [vmem:[#allocation2] sm:$0xff] %vm19_vm0, %v118_v0 }
   0x2   :  { %21 = vst.msk [vmem:[#allocation2 + $0x8] sm:$0xff] %vm19_vm0, %v118_v0  ;;  %v31_v4 = vpack.c.bf16 %v28_v2, %v27_v1  ;;  %v30_v5 = vld [vmem:[%s173_s1 + $0x18] sm:$0xff]  ;;  %v24_v7 = vld [vmem:[%s174_s0] sm:$0xff]  ;;  %v25_v8 = vld [vmem:[%s174_s0 + $0x8] sm:$0xff] }
   0x3   :  { %v32_v6 = vpack.c.bf16 %v30_v5, %v29_v3  ;;  %v26_v9 = vpack.c.bf16 %v25_v8, %v24_v7  ;;  %v104_v18 = vld [vmem:[%s175_s2] ss:$0 sm:$0xff] }
   0x4   :  { %109 = vmatpush3.bf16.msra.mxu0 %v31_v4 }
   0x5   :  { %110 = vmatprep.subr.bf16.mxu0 %v118_v0 }
   0x8   :  { %111 = vmatpush3.bf16.msra.mxu0 %v32_v6  ;;  %v22_v10 = vld [vmem:[#allocation2] sm:$0xff] }
   0x9   :  { %v23_v12 = vld [vmem:[#allocation2 + $0x8] sm:$0xff] }
   0xb   :  { %113 = vmatmul.mubr.msk.bf16.vlgmr.msra.gmra.mrb[0].mxu0 %vm33_vm2, %v26_v9 }
  0xde   :  { %v71_v11 = vpop.f32.mrb[0].mxu0 }
  0xdf   :  { %v78_v13 = vadd.f32 %v71_v11, %v22_v10  ;;  %v114_v14 = vpop.f32.mrb[1].mxu0 }
  0xe0   :  { %v74_v15 = vpop.f32.mrb[2].mxu0 }
  0xe1   :  { %81 = vst.msk [vmem:[#allocation2] sm:$0xff] %vm19_vm0, %v78_v13  ;;  %v79_v16 = vadd.f32 %v74_v15, %v23_v12  ;;  %v115_v17 = vpop.f32.mrb[3].mxu0 }
  0xe3   :  { %82 = vst.msk [vmem:[#allocation2 + $0x8] sm:$0xff] %vm19_vm0, %v79_v16 }
  0xe8   :  { %v86_v19 = vld [vmem:[#allocation2] sm:$0xff] }
  0xe9   :  { %v95_v20 = vadd.f32 %v104_v18, %v86_v19 }
  0xea   :  { %v87_v21 = vld [vmem:[#allocation2 + $0x8] sm:$0xff] }
  0xeb   :  { %97 = vst.msk [vmem:[%s176_s3] sm:$0xff] %vm19_vm0, %v95_v20  ;;  %v96_v22 = vadd.f32 %v104_v18, %v87_v21 }
  0xed   :  { %98 = vst.msk [vmem:[%s176_s3 + $0x8] sm:$0xff] %vm19_vm0, %v96_v22 }

// kernel: decoder_forward.24
= control target key start
LH: loop header
LB: loop body
LE: loop exit
PB: predicated region body
PF: predicated region fallthrough
CT: control target
= control target key end

     0   :  { %v248_v0 = vmov 0.0   ;;  %vm249_vm0 = vmmov 0   ;;  %vm43_vm1 = vcmask 261120   ;;  %vm110_vm2 = vcmask 523264   ;;  %s357_s1 = inlined_call_operand.vmem [shape: f32[32,64], index: 1, kind: input, shape index: {}]   ;;  %s358_s3 = inlined_call_operand.vmem [shape: f32[64,32], index: 3, kind: input, shape index: {}]   ;;  %s359_s0 = inlined_call_operand.vmem [shape: f32[16,32], index: 0, kind: input, shape index: {}]   ;;  %s360_s2 = inlined_call_operand.vmem [shape: f32[1,64], index: 2, kind: input, shape index: {}]   ;;  %s361_s4 = inlined_call_operand.vmem [shape: f32[1,32], index: 4, kind: input, shape index: {}]   ;;  %s362_s5 = inlined_call_operand.vmem [shape: f32[1,32], index: 5, kind: input, shape index: {}]   ;;  %s363_s6 = inlined_call_operand.vmem [shape: f32[1,32], index: 6, kind: input, shape index: {}]   ;;  %s364_s7 = inlined_call_operand.vmem [shape: f32[16,32], index: 7, kind: output, shape index: {}]  }
   0x1   :  { %222 = vmatprep.subr.bf16.mxu0 %v248_v0  ;;  %v30_v1 = vld [vmem:[%s357_s1] sm:$0xff]  ;;  %v31_v2 = vld [vmem:[%s357_s1 + $0x8] sm:$0xff]  ;;  %v32_v3 = vld [vmem:[%s357_s1 + $0x10] sm:$0xff]  ;;  %226 = vmatprep.mubr.msk.bf16.mxu0 %vm249_vm0, %v248_v0 }
   0x2   :  { %v34_v4 = vpack.c.bf16 %v31_v2, %v30_v1  ;;  %v33_v5 = vld [vmem:[%s357_s1 + $0x18] sm:$0xff]  ;;  %230 = vmatprep.subr.bf16.mxu1 %v248_v0  ;;  %238 = vmatprep.mubr.msk.bf16.mxu1 %vm249_vm0, %v248_v0  ;;  %v91_v6 = vld [vmem:[%s358_s3] sm:$0xff]  ;;  %v92_v7 = vld [vmem:[%s358_s3 + $0x8] sm:$0xff] }
   0x3   :  { %v93_v8 = vld [vmem:[%s358_s3 + $0x10] sm:$0xff]  ;;  %v35_v9 = vpack.c.bf16 %v33_v5, %v32_v3  ;;  %v27_v10 = vld [vmem:[%s359_s0] sm:$0xff]  ;;  %v28_v11 = vld [vmem:[%s359_s0 + $0x8] sm:$0xff]  ;;  %v99_v12 = vpack.c.bf16 %v92_v7, %v91_v6 }
   0x4   :  { %223 = vmatpush3.bf16.msra.mxu0 %v34_v4  ;;  %v94_v13 = vld [vmem:[%s358_s3 + $0x18] sm:$0xff]  ;;  %v29_v15 = vpack.c.bf16 %v28_v11, %v27_v10  ;;  %v95_v16 = vld [vmem:[%s358_s3 + $0x20] sm:$0xff]  ;;  %v96_v17 = vld [vmem:[%s358_s3 + $0x28] sm:$0xff] }
   0x5   :  { %224 = vmatprep.subr.bf16.mxu0 %v248_v0  ;;  %231 = vmatpush3.bf16.msra.mxu1 %v99_v12  ;;  %v100_v14 = vpack.c.bf16 %v94_v13, %v93_v8  ;;  %v101_v18 = vpack.c.bf16 %v96_v17, %v95_v16  ;;  %v97_v19 = vld [vmem:[%s358_s3 + $0x30] sm:$0xff]  ;;  %v98_v20 = vld [vmem:[%s358_s3 + $0x38] sm:$0xff]  ;;  %v208_v22 = vld [vmem:[%s360_s2] ss:$0 sm:$0xff] }
   0x6   :  { %232 = vmatprep.subr.bf16.mxu1 %v248_v0  ;;  %v102_v21 = vpack.c.bf16 %v98_v20, %v97_v19  ;;  %v210_v32 = vld [vmem:[%s361_s4] ss:$0 sm:$0xff] }
   0x7   :  { %v212_v60 = vld [vmem:[%s362_s5] ss:$0 sm:$0xff] }
   0x8   :  { %225 = vmatpush3.bf16.msra.mxu0 %v35_v9  ;;  %v213_v62 = vld [vmem:[%s363_s6] ss:$0 sm:$0xff] }
   0x9   :  { %233 = vmatpush3.bf16.msra.mxu1 %v100_v14 }
   0xa   :  { %234 = vmatprep.subr.bf16.mxu1 %v248_v0 }
   0xb   :  { %227 = vmatmul.mubr.msk.bf16.vlgmr.msra.gmra.mrb[0].mxu0 %vm43_vm1, %v29_v15 }
   0xd   :  { %235 = vmatpush3.bf16.msra.mxu1 %v101_v18 }
   0xe   :  { %236 = vmatprep.subr.bf16.mxu1 %v248_v0 }
  0x11   :  { %237 = vmatpush3.bf16.msra.mxu1 %v102_v21 }
  0xde   :  { %v81_v23 = vpop.f32.mrb[0].mxu0 }
  0xdf   :  { %v82_v24 = vadd.f32 %v208_v22, %v81_v23  ;;  %v228_v25 = vpop.f32.mrb[1].mxu0 }
  0xe0   :  { %v84_v26 = vpop.f32.mrb[2].mxu0 }
  0xe1   :  { %v85_v27 = vadd.f32 %v208_v22, %v84_v26  ;;  %v229_v28 = vpop.f32.mrb[3].mxu0  ;;  %v88_v29 = vmax.f32 %v82_v24, 0.0 }
  0xe3   :  { %v89_v30 = vmax.f32 %v85_v27, 0.0 }
  0xe5   :  { %v90_v31 = vpack.c.bf16 %v89_v30, %v88_v29 }
  0xe7   :  { %239 = vmatmul.mubr.msk.bf16.vlgmr.msra.gmra.mrb[0].mxu1 %vm110_vm2, %v90_v31 }
 0x1ba   :  { %v148_v33 = vpop.f32.mrb[0].mxu1 }
 0x1bb   :  { %v149_v34 = vadd.f32 %v210_v32, %v148_v33  ;;  %v240_v35 = vpop.f32.mrb[1].mxu1 }
 0x1bc   :  { %v151_v36 = vpop.f32.mrb[2].mxu1 }
 0x1bd   :  { %v152_v37 = vadd.f32 %v210_v32, %v151_v36  ;;  %v241_v38 = vpop.f32.mrb[3].mxu1  ;;  %v155_v39 = vadd.f32 %v149_v34, %v27_v10 }
 0x1bf   :  { %v157_v40 = vsel %vm43_vm1, %v155_v39, 0.0  ;;  %v156_v41 = vadd.f32 %v152_v37, %v28_v11 }
 0x1c0   :  { %158 = vadd.xlane.f32.xlu0 %v157_v40 }
 0x1c1   :  { %v160_v42 = vsel %vm43_vm1, %v156_v41, 0.0 }
 0x1c4   :  { %161 = vadd.xlane.f32.xlu0 %v160_v42 }
 0x24d   :  { %v159_v43 = vpop.xlane.xlu0 %158 }
 0x24e   :  { %v164_v44 = vmul.f32 0.03125, %v159_v43 }
 0x250   :  { %v166_v45 = vsub.f32 %v155_v39, %v164_v44 }
 0x251   :  { %v162_v46 = vpop.xlane.xlu0 %161 }
 0x252   :  { %v165_v47 = vmul.f32 0.03125, %v162_v46  ;;  %v168_v48 = vmul.f32 %v166_v45, %v166_v45 }
 0x254   :  { %v167_v49 = vsub.f32 %v156_v41, %v165_v47  ;;  %v170_v50 = vsel %vm43_vm1, %v168_v48, 0.0 }
 0x255   :  { %171 = vadd.xlane.f32.xlu1 %v170_v50 }
 0x256   :  { %v169_v51 = vmul.f32 %v167_v49, %v167_v49 }
 0x258   :  { %v173_v52 = vsel %vm43_vm1, %v169_v51, 0.0 }
 0x259   :  { %174 = vadd.xlane.f32.xlu1 %v173_v52 }
 0x2e2   :  { %v172_v53 = vpop.xlane.xlu1 %171 }
 0x2e3   :  { %v176_v54 = vmul.f32 0.03125, %v172_v53 }
 0x2e5   :  { %v178_v55 = vadd.f32 1e-05, %v176_v54 }
 0x2e6   :  { %v175_v56 = vpop.xlane.xlu1 %174 }
 0x2e7   :  { %244 = vrsqrt.f32 %v178_v55  ;;  %v177_v57 = vmul.f32 0.03125, %v175_v56 }
 0x2e9   :  { %v179_v58 = vadd.f32 1e-05, %v177_v57 }
 0x2eb   :  { %246 = vrsqrt.f32 %v179_v58 }
 0x2f1   :  { %v245_v59 = vpop.eup %244 }
 0x2f2   :  { %v182_v61 = vmul.f32 %v245_v59, %v166_v45 }
 0x2f4   :  { %v191_v63 = vmul.f32 %v212_v60, %v182_v61 }
 0x2f5   :  { %v247_v0 = vpop.eup %246 }
 0x2f6   :  { %v200_v1 = vadd.f32 %v213_v62, %v191_v63  ;;  %v183_v2 = vmul.f32 %v247_v0, %v167_v49 }
 0x2f8   :  { %202 = vst.msk [vmem:[%s364_s7] sm:$0xff] %vm43_vm1, %v200_v1  ;;  %v192_v3 = vmul.f32 %v212_v60, %v183_v2 }
 0x2fa   :  { %v201_v4 = vadd.f32 %v213_v62, %v192_v3 }
 0x2fc   :  { %203 = vst.msk [vmem:[%s364_s7 + $0x8] sm:$0xff] %vm43_vm1, %v201_v4 }

// kernel: decoder_forward.33
= control target key start
LH: loop header
LB: loop body
LE: loop exit
PB: predicated region body
PF: predicated region fallthrough
CT: control target
= control target key end

     0   :  { %v158_v3 = vmov 0.0   ;;  %vm159_vm0 = vmmov 0   ;;  %vm20_vm1 = vcmask 130048   ;;  %s222_s0 = inlined_call_operand.vmem [shape: f32[16,32], index: 0, kind: input, shape index: {}]   ;;  %s223_s1 = inlined_call_operand.vmem [shape: f32[32,16], index: 1, kind: input, shape index: {}]   ;;  %s224_s2 = inlined_call_operand.vmem [shape: f32[1,16], index: 2, kind: input, shape index: {}]   ;;  %s225_s3 = inlined_call_operand.hbm [shape: f32[16,16], index: 3, kind: output, shape index: {}]  }
   0x1   :  { %v28_v0 = vld [vmem:[%s223_s1] sm:$0xff]  ;;  %v29_v1 = vld [vmem:[%s223_s1 + $0x8] sm:$0xff]  ;;  %v30_v2 = vld [vmem:[%s223_s1 + $0x10] sm:$0xff]  ;;  %121 = vmatprep.subr.bf16.mxu0 %v158_v3  ;;  %125 = vmatprep.mubr.msk.bf16.mxu0 %vm159_vm0, %v158_v3  ;;  %21 = vst.msk [vmem:[#allocation2] sm:$0xff] %vm20_vm1, %v158_v3 }
   0x2   :  { %v32_v4 = vpack.c.bf16 %v29_v1, %v28_v0  ;;  %v31_v5 = vld [vmem:[%s223_s1 + $0x18] sm:$0xff]  ;;  %22 = vst.msk [vmem:[#allocation2 + $0x8] sm:$0xff] %vm20_vm1, %v158_v3 }
   0x3   :  { %8 = vsyncpa [#allocation4], 0  ;;  %v33_v6 = vpack.c.bf16 %v31_v5, %v30_v2  ;;  %v25_v7 = vld [vmem:[%s222_s0] sm:$0xff]  ;;  %v26_v8 = vld [vmem:[%s222_s0 + $0x8] sm:$0xff]  ;;  %vm34_vm2 = vcmask 261120   ;;  %s160_s0 = smov [#allocation3]  }
   0x4   :  { %122 = vmatpush3.bf16.msra.mxu0 %v32_v4  ;;  %v27_v9 = vpack.c.bf16 %v26_v8, %v25_v7  ;;  %v117_v18 = vld [vmem:[%s224_s2] ss:$0 sm:$0xff]  ;;  %s105_s25 = sshll.u32 %s160_s0, 4  ;;  %s106_s25 = int_to_ptr.vmem [resolvable:$true] %s105_s25 }
   0x5   :  { %123 = vmatprep.subr.bf16.mxu0 %v158_v3  ;;  %s134_s26 = scalar_lea.vmem %s106_s25, 256  ;;  %p139_p1 = scmp.lt.s32.totalorder %s106_s25, %s106_s25 }
   0x6   :  { %p135_p0 = scmp.ne.s32.totalorder %s106_s25, %s134_s26  ;;  %p140_p2 = scmp.lt.s32.totalorder %s134_s26, %s134_s26 }
   0x8   :  { %124 = vmatpush3.bf16.msra.mxu0 %v33_v6  ;;  %v23_v10 = vld [vmem:[#allocation2] sm:$0xff]  ;;  %p141_p3 = por %p140_p2, %p139_p1 }
   0x9   :  { %v24_v12 = vld [vmem:[#allocation2 + $0x8] sm:$0xff] }
   0xa   :  { %p142_p4 = pnand %p141_p3, %p135_p0 }
   0xb   :  { %126 = vmatmul.mubr.msk.bf16.vlgmr.msra.gmra.mrb[0].mxu0 %vm34_vm2, %v27_v9 }
  0xde   :  { %v72_v11 = vpop.f32.mrb[0].mxu0 }
  0xdf   :  { %v79_v13 = vadd.f32 %v72_v11, %v23_v10  ;;  %v127_v14 = vpop.f32.mrb[1].mxu0 }
  0xe0   :  { %v75_v15 = vpop.f32.mrb[2].mxu0 }
  0xe1   :  { %82 = vst.msk [vmem:[#allocation2] sm:$0xff] %vm20_vm1, %v79_v13  ;;  %v80_v16 = vadd.f32 %v75_v15, %v24_v12  ;;  %v128_v17 = vpop.f32.mrb[3].mxu0 }
  0xe3   :  { %83 = vst.msk [vmem:[#allocation2 + $0x8] sm:$0xff] %vm20_vm1, %v80_v16 }
  0xe8   :  { %v87_v19 = vld [vmem:[#allocation2] sm:$0xff] }
  0xe9   :  { %v96_v20 = vadd.f32 %v117_v18, %v87_v19 }
  0xea   :  { %v88_v21 = vld [vmem:[#allocation2 + $0x8] sm:$0xff] }
  0xeb   :  { %v97_v22 = vadd.f32 %v117_v18, %v88_v21  ;;  %98 = vst.msk [vmem:[#allocation3] sm:$0xff] %vm20_vm1, %v96_v20 }
  0xed   :  { %99 = vst.msk [vmem:[#allocation3 + $0x8] sm:$0xff] %vm20_vm1, %v97_v22 }
  0xee   :  { %145 = shalt.err (!%p142_p4)
}
  0xef   :  { %s146_s28 = scalar_lea.hbm %s225_s3, 256 }
  0xf0   :  { %p147_p5 = scmp.ne.s32.totalorder %s225_s3, %s146_s28  ;;  %p150_p6 = scmp.lt.u32.totalorder %s146_s28, %s225_s3 }
  0xf2   :  { %p152_p7 = pnand %p150_p6, %p147_p5 }
  0xf4   :  { %155 = shalt.err (!%p152_p7)
}
  0xf5   :  { %s161_s6 = smov 128   ;;  %s162_s7 = smov 8  }
  0xf6   :  { %111 = dma.vmem_to_hbm [thread:$0]  %s106_s25, 256, %s225_s3, [#allocation4], %s161_s6, %s161_s6, %s162_s7  }
  0xf7   :  { %156 = dma.done.wait [#allocation4], 256  }
  0xf8   :  { %157 = vsyncadd [#allocation4], 4294967040 }
  0xf9   :  { %115 = vsyncpa [#allocation4], 1 }

</bundles_post_ra>
